<compile_context>
chip_gen: v7x
topology: tpu7x:2x2x1
jax: 0.10.0
libtpu: 0.0.40
codegen_flags: <defaults>
</compile_context>

<pallas_src>
import functools

import jax
import jax.numpy as jnp
from jax.experimental import pallas as pl
from jax.experimental.pallas import tpu as pltpu


def _round_up(n, m):
    return ((n + m - 1) // m) * m


# ---------------------------------------------------------------------------
# Kernel: one row-tile of the full VAE forward per grid step.
# Weights/bias refs are identical blocks for every grid step (resident in VMEM).
# ---------------------------------------------------------------------------
def _vae_forward_kernel(
    x_ref, eps_ref,
    w1_ref, w2_ref, wh_ref, w4_ref, w5_ref, w6_ref,
    b_ref,
    recon_ref, head_ref,
    *, h1, h2, zd, head_pad,
):
    def mm(a, w_ref):
        # bf16 x bf16 on the MXU, f32 accumulation.
        w = w_ref[...]
        return jnp.dot(a.astype(w.dtype), w, preferred_element_type=jnp.float32)

    # Row-packed biases: row i holds the bias of layer i in its leading lanes.
    b1 = b_ref[0:1, :h1]
    b2 = b_ref[1:2, :h2]
    bh = b_ref[2:3, :head_pad]
    b4 = b_ref[3:4, :h2]
    b5 = b_ref[4:5, :h1]
    b6 = b_ref[5:6, :]            # full padded x width (pad region is zero)

    # ---------------- encoder ----------------
    h = jnp.maximum(mm(x_ref[...], w1_ref) + b1, 0.0)
    h = jnp.maximum(mm(h, w2_ref) + b2, 0.0)

    head = mm(h, wh_ref) + bh     # fused, lane-dense [mu | log_var | 0-pad]
    mu = head[:, :zd]
    log_var = head[:, zd:2 * zd]

    # ---------------- sampling (reparameterization) ----------------
    std = jnp.exp(0.5 * log_var)
    z = eps_ref[...] * std + mu

    # ---------------- decoder ----------------
    d = jnp.maximum(mm(z, w4_ref) + b4, 0.0)
    d = jnp.maximum(mm(d, w5_ref) + b5, 0.0)
    recon_full = jax.nn.sigmoid(mm(d, w6_ref) + b6)     # (tile_m, x_pad)

    # Store only the valid x_dim lanes; matmul itself stays 1024-aligned.
    x_out = recon_ref.shape[-1]
    recon_ref[...] = recon_full[:, :x_out].astype(recon_ref.dtype)
    head_ref[...] = head.astype(head_ref.dtype)


@functools.partial(jax.jit, static_argnames=("tile_m",))
def vae_forward(x, eps, p, *, tile_m=None):
    """Full VAE forward as one batched Pallas kernel.

    Args:
      x:   (B, x_dim) input (f32 or bf16; bf16 halves the x DMA, the kernel
           casts per-matmul anyway, so either dtype is accepted).
      eps: (B, z_dim) f32 standard-normal noise (torch.randn_like equivalent).
      p:   prepared params (see prepare_params).
      tile_m: rows per grid step. Default: 256 (v6e/v7x MXU-filling) when
           B >= 256, 128 when B >= 128, else one tile. v5e: prefer 128.
    Returns:
      (recon, mu, log_var); recon at x_dim width, f32.
    """
    B, x_dim = x.shape
    x_pad = p["w1"].shape[0]
    h1 = p["w1"].shape[1]
    h2 = p["w2"].shape[1]
    zd = p["w4"].shape[0]
    head_pad = p["wh"].shape[1]

    if tile_m is None:
        tile_m = 256 if B >= 256 else (128 if B >= 128 else _round_up(B, 8))
    b_pad = _round_up(B, tile_m)

    xp = jnp.pad(x, ((0, b_pad - B), (0, x_pad - x_dim)))
    eps_p = jnp.pad(eps, ((0, b_pad - B), (0, 0))) if b_pad != B else eps

    grid = (b_pad // tile_m,)
    row = lambda i: (i, 0)       # activations / outputs: tiled over rows
    const = lambda i: (0, 0)     # weights / bias: same block every step (resident)

    kernel = functools.partial(
        _vae_forward_kernel, h1=h1, h2=h2, zd=zd, head_pad=head_pad)

    recon, head = pl.pallas_call(
        kernel,
        grid=grid,
        out_shape=(
            jax.ShapeDtypeStruct((b_pad, x_dim), jnp.float32),    # recon
            jax.ShapeDtypeStruct((b_pad, head_pad), jnp.float32), # [mu|logvar|pad]
        ),
        in_specs=[
            pl.BlockSpec((tile_m, x_pad), row),
            pl.BlockSpec((tile_m, zd), row),
            pl.BlockSpec(p["w1"].shape, const),
            pl.BlockSpec(p["w2"].shape, const),
            pl.BlockSpec(p["wh"].shape, const),
            pl.BlockSpec(p["w4"].shape, const),
            pl.BlockSpec(p["w5"].shape, const),
            pl.BlockSpec(p["w6"].shape, const),
            pl.BlockSpec(p["bias"].shape, const),
        ],
        out_specs=(
            pl.BlockSpec((tile_m, x_dim), row),
            pl.BlockSpec((tile_m, head_pad), row),
        ),
        compiler_params=pltpu.CompilerParams(
            dimension_semantics=("parallel",)),   # v7x: shard rows over 2 TCs
    )(xp, eps_p, p["w1"], p["w2"], p["wh"], p["w4"], p["w5"], p["w6"], p["bias"])

    if b_pad != B:
        recon = recon[:B]
        head = head[:B]
    mu = head[:, :zd]
    log_var = head[:, zd:2 * zd]
    return recon, mu, log_var


# ---------------------------------------------------------------------------
# Parameter construction (PyTorch nn.Linear layout) + kernel-layout packing.
# ---------------------------------------------------------------------------
def init_torch_params(key, x_dim, h_dim1, h_dim2, z_dim):
    """nn.Linear-style params: W (out, in), b (out,), uniform(-1/sqrt(in), ...)."""
    layers = {
        "1": (h_dim1, x_dim), "2": (h_dim2, h_dim1),
        "31": (z_dim, h_dim2), "32": (z_dim, h_dim2),
        "4": (h_dim2, z_dim), "5": (h_dim1, h_dim2), "6": (x_dim, h_dim1),
    }
    params = {}
    keys = jax.random.split(key, 2 * len(layers))
    for i, (name, (out_f, in_f)) in enumerate(layers.items()):
        bound = 1.0 / jnp.sqrt(float(in_f))
        params[f"W{name}"] = jax.random.uniform(
            keys[2 * i], (out_f, in_f), jnp.float32, -bound, bound)
        params[f"b{name}"] = jax.random.uniform(
            keys[2 * i + 1], (out_f,), jnp.float32, -bound, bound)
    return params


def prepare_params(raw, x_dim, x_pad):
    """Transpose to (in, out), pad x_dim->x_pad, fuse+pad the mu/logvar head to
    128 lanes, cast weights to bf16, pack all biases into one (8, x_pad) f32."""
    t = lambda n: raw[f"W{n}"].T  # (in, out)
    zd = raw["W31"].shape[0]
    head_pad = max(128, _round_up(2 * zd, 128))

    w1 = jnp.pad(t("1"), ((0, x_pad - x_dim), (0, 0))).astype(jnp.bfloat16)
    w2 = t("2").astype(jnp.bfloat16)
    wh = jnp.pad(jnp.concatenate([t("31"), t("32")], axis=1),
                 ((0, 0), (0, head_pad - 2 * zd))).astype(jnp.bfloat16)
    w4 = t("4").astype(jnp.bfloat16)
    w5 = t("5").astype(jnp.bfloat16)
    w6 = jnp.pad(t("6"), ((0, 0), (0, x_pad - x_dim))).astype(jnp.bfloat16)

    bias = jnp.zeros((8, x_pad), jnp.float32)
    bias = bias.at[0, : raw["b1"].shape[0]].set(raw["b1"])
    bias = bias.at[1, : raw["b2"].shape[0]].set(raw["b2"])
    bias = bias.at[2, : 2 * zd].set(jnp.concatenate([raw["b31"], raw["b32"]]))
    bias = bias.at[3, : raw["b4"].shape[0]].set(raw["b4"])
    bias = bias.at[4, : raw["b5"].shape[0]].set(raw["b5"])
    bias = bias.at[5, : raw["b6"].shape[0]].set(raw["b6"])

    return dict(w1=w1, w2=w2, wh=wh, w4=w4, w5=w5, w6=w6, bias=bias)


# Pure-JAX reference using the SAME prepared (bf16) params and math.
def vae_forward_ref(x, eps, p):
    x_dim = x.shape[1]
    x_pad = p["w1"].shape[0]
    h1 = p["w1"].shape[1]
    h2 = p["w2"].shape[1]
    zd = p["w4"].shape[0]
    head_pad = p["wh"].shape[1]
    b = p["bias"]

    def mm(a, w):
        return jnp.dot(a.astype(w.dtype), w, preferred_element_type=jnp.float32)

    xp = jnp.pad(x, ((0, 0), (0, x_pad - x_dim)))
    h = jax.nn.relu(mm(xp, p["w1"]) + b[0:1, :h1])
    h = jax.nn.relu(mm(h, p["w2"]) + b[1:2, :h2])
    head = mm(h, p["wh"]) + b[2:3, :head_pad]
    mu, log_var = head[:, :zd], head[:, zd:2 * zd]
    z = eps * jnp.exp(0.5 * log_var) + mu
    d = jax.nn.relu(mm(z, p["w4"]) + b[3:4, :h2])
    d = jax.nn.relu(mm(d, p["w5"]) + b[4:5, :h1])
    recon = jax.nn.sigmoid(mm(d, p["w6"]) + b[5:6, :])
    return recon[:, :x_dim], mu, log_var


if __name__ == "__main__":
    X_DIM, H_DIM1, H_DIM2, Z_DIM = 978, 256, 128, 32
    X_PAD = 1024
    BATCH, TILE_M = 32, 8   # grid=(4,): exercises weight residency + row pipelining

    root = jax.random.PRNGKey(0)
    k_params, k_x, k_eps = jax.random.split(root, 3)

    raw = init_torch_params(k_params, X_DIM, H_DIM1, H_DIM2, Z_DIM)
    params = prepare_params(raw, X_DIM, X_PAD)

    x = jax.random.normal(k_x, (BATCH, X_DIM), jnp.float32)
    # eps = randn_like(std) from `sampling`, drawn deterministically outside.
    eps = jax.random.normal(k_eps, (BATCH, Z_DIM), jnp.float32)

    recon, mu, log_var = jax.block_until_ready(
        vae_forward(x, eps, params, tile_m=TILE_M))

    # Sanity check against a pure-JAX reference with identical bf16 math.
    recon_r, mu_r, log_var_r = vae_forward_ref(x, eps, params)
    assert recon.shape == (BATCH, X_DIM)
    assert mu.shape == (BATCH, Z_DIM) and log_var.shape == (BATCH, Z_DIM)
    assert jnp.allclose(recon, recon_r, atol=1e-2, rtol=1e-2)
    assert jnp.allclose(mu, mu_r, atol=1e-2, rtol=1e-2)
    assert jnp.allclose(log_var, log_var_r, atol=1e-2, rtol=1e-2)

    print("KERNEL_OK")
</pallas_src>

<mosaic_0001>
module attributes {stable_mosaic.version = 11 : i64} {
  func.func @_vae_forward_kernel(%arg0: i32, %arg1: memref<8x1024xf32, #tpu.memory_space<vmem>>, %arg2: memref<8x32xf32, #tpu.memory_space<vmem>>, %arg3: memref<1024x256xbf16, #tpu.memory_space<vmem>>, %arg4: memref<256x128xbf16, #tpu.memory_space<vmem>>, %arg5: memref<128x128xbf16, #tpu.memory_space<vmem>>, %arg6: memref<32x128xbf16, #tpu.memory_space<vmem>>, %arg7: memref<128x256xbf16, #tpu.memory_space<vmem>>, %arg8: memref<256x1024xbf16, #tpu.memory_space<vmem>>, %arg9: memref<8x1024xf32, #tpu.memory_space<vmem>>, %arg10: memref<8x978xf32, #tpu.memory_space<vmem>>, %arg11: memref<8x128xf32, #tpu.memory_space<vmem>>) attributes {dimension_semantics = [#tpu.dimension_semantics<parallel>], iteration_bounds = array<i64: 4>, scalar_prefetch = 0 : i64, scratch_operands = 0 : i64, tpu.core_type = #tpu.core_type<tc>, window_params = [{transform_indices = @transform_0, window_bounds = array<i64: 8, 1024>}, {transform_indices = @transform_1, window_bounds = array<i64: 8, 32>}, {pipeline_mode = #tpu.pipeline_mode<synchronous>, transform_indices = @transform_2, window_bounds = array<i64: 1024, 256>}, {pipeline_mode = #tpu.pipeline_mode<synchronous>, transform_indices = @transform_3, window_bounds = array<i64: 256, 128>}, {pipeline_mode = #tpu.pipeline_mode<synchronous>, transform_indices = @transform_4, window_bounds = array<i64: 128, 128>}, {pipeline_mode = #tpu.pipeline_mode<synchronous>, transform_indices = @transform_5, window_bounds = array<i64: 32, 128>}, {pipeline_mode = #tpu.pipeline_mode<synchronous>, transform_indices = @transform_6, window_bounds = array<i64: 128, 256>}, {pipeline_mode = #tpu.pipeline_mode<synchronous>, transform_indices = @transform_7, window_bounds = array<i64: 256, 1024>}, {pipeline_mode = #tpu.pipeline_mode<synchronous>, transform_indices = @transform_8, window_bounds = array<i64: 8, 1024>}, {transform_indices = @transform_9, window_bounds = array<i64: 8, 978>}, {transform_indices = @transform_10, window_bounds = array<i64: 8, 128>}]} {
    %c0 = arith.constant 0 : index
    %c0_0 = arith.constant 0 : index
    %0 = vector.load %arg9[%c0, %c0_0] : memref<8x1024xf32, #tpu.memory_space<vmem>>, vector<1x256xf32>
    %c1 = arith.constant 1 : index
    %c0_1 = arith.constant 0 : index
    %1 = vector.load %arg9[%c1, %c0_1] : memref<8x1024xf32, #tpu.memory_space<vmem>>, vector<1x128xf32>
    %c2 = arith.constant 2 : index
    %c0_2 = arith.constant 0 : index
    %2 = vector.load %arg9[%c2, %c0_2] : memref<8x1024xf32, #tpu.memory_space<vmem>>, vector<1x128xf32>
    %c3 = arith.constant 3 : index
    %c0_3 = arith.constant 0 : index
    %3 = vector.load %arg9[%c3, %c0_3] : memref<8x1024xf32, #tpu.memory_space<vmem>>, vector<1x128xf32>
    %c4 = arith.constant 4 : index
    %c0_4 = arith.constant 0 : index
    %4 = vector.load %arg9[%c4, %c0_4] : memref<8x1024xf32, #tpu.memory_space<vmem>>, vector<1x256xf32>
    %c5 = arith.constant 5 : index
    %c0_5 = arith.constant 0 : index
    %5 = vector.load %arg9[%c5, %c0_5] : memref<8x1024xf32, #tpu.memory_space<vmem>>, vector<1x1024xf32>
    %c0_6 = arith.constant 0 : index
    %c0_7 = arith.constant 0 : index
    %6 = vector.load %arg1[%c0_6, %c0_7] : memref<8x1024xf32, #tpu.memory_space<vmem>>, vector<8x1024xf32>
    %c0_8 = arith.constant 0 : index
    %c0_9 = arith.constant 0 : index
    %7 = vector.load %arg3[%c0_8, %c0_9] : memref<1024x256xbf16, #tpu.memory_space<vmem>>, vector<1024x256xbf16>
    %8 = arith.truncf %6 : vector<8x1024xf32> to vector<8x1024xbf16>
    %cst = arith.constant dense<0.000000e+00> : vector<8x256xf32>
    %9 = tpu.matmul %8, %7, %cst {dimension_numbers = #tpu.dot_dimension_numbers<[1], [0], [0], [1], [0, 0, 1, 1], [], []>} : vector<8x1024xbf16>, vector<1024x256xbf16>, vector<8x256xf32> -> vector<8x256xf32>
    %10 = vector.broadcast %0 : vector<1x256xf32> to vector<8x256xf32>
    %11 = arith.addf %9, %10 : vector<8x256xf32>
    %cst_10 = arith.constant 0.000000e+00 : f32
    %12 = vector.broadcast %cst_10 : f32 to vector<8x256xf32>
    %13 = arith.maximumf %11, %12 : vector<8x256xf32>
    %c0_11 = arith.constant 0 : index
    %c0_12 = arith.constant 0 : index
    %14 = vector.load %arg4[%c0_11, %c0_12] : memref<256x128xbf16, #tpu.memory_space<vmem>>, vector<256x128xbf16>
    %15 = arith.truncf %13 : vector<8x256xf32> to vector<8x256xbf16>
    %cst_13 = arith.constant dense<0.000000e+00> : vector<8x128xf32>
    %16 = tpu.matmul %15, %14, %cst_13 {dimension_numbers = #tpu.dot_dimension_numbers<[1], [0], [0], [1], [0, 0, 1, 1], [], []>} : vector<8x256xbf16>, vector<256x128xbf16>, vector<8x128xf32> -> vector<8x128xf32>
    %17 = vector.broadcast %1 : vector<1x128xf32> to vector<8x128xf32>
    %18 = arith.addf %16, %17 : vector<8x128xf32>
    %cst_14 = arith.constant 0.000000e+00 : f32
    %19 = vector.broadcast %cst_14 : f32 to vector<8x128xf32>
    %20 = arith.maximumf %18, %19 : vector<8x128xf32>
    %c0_15 = arith.constant 0 : index
    %c0_16 = arith.constant 0 : index
    %21 = vector.load %arg5[%c0_15, %c0_16] : memref<128x128xbf16, #tpu.memory_space<vmem>>, vector<128x128xbf16>
    %22 = arith.truncf %20 : vector<8x128xf32> to vector<8x128xbf16>
    %cst_17 = arith.constant dense<0.000000e+00> : vector<8x128xf32>
    %23 = tpu.matmul %22, %21, %cst_17 {dimension_numbers = #tpu.dot_dimension_numbers<[1], [0], [0], [1], [0, 0, 1, 1], [], []>} : vector<8x128xbf16>, vector<128x128xbf16>, vector<8x128xf32> -> vector<8x128xf32>
    %24 = vector.broadcast %2 : vector<1x128xf32> to vector<8x128xf32>
    %25 = arith.addf %23, %24 : vector<8x128xf32>
    %26 = vector.extract_strided_slice %25 {offsets = [0, 0], sizes = [8, 32], strides = [1, 1]} : vector<8x128xf32> to vector<8x32xf32>
    %27 = vector.extract_strided_slice %25 {offsets = [0, 32], sizes = [8, 32], strides = [1, 1]} : vector<8x128xf32> to vector<8x32xf32>
    %cst_18 = arith.constant 5.000000e-01 : f32
    %28 = vector.broadcast %cst_18 : f32 to vector<8x32xf32>
    %29 = arith.mulf %28, %27 : vector<8x32xf32>
    %30 = math.exp %29 : vector<8x32xf32>
    %c0_19 = arith.constant 0 : index
    %c0_20 = arith.constant 0 : index
    %31 = vector.load %arg2[%c0_19, %c0_20] : memref<8x32xf32, #tpu.memory_space<vmem>>, vector<8x32xf32>
    %32 = arith.mulf %31, %30 : vector<8x32xf32>
    %33 = arith.addf %32, %26 : vector<8x32xf32>
    %c0_21 = arith.constant 0 : index
    %c0_22 = arith.constant 0 : index
    %34 = vector.load %arg6[%c0_21, %c0_22] : memref<32x128xbf16, #tpu.memory_space<vmem>>, vector<32x128xbf16>
    %35 = arith.truncf %33 : vector<8x32xf32> to vector<8x32xbf16>
    %cst_23 = arith.constant dense<0.000000e+00> : vector<8x128xf32>
    %36 = tpu.matmul %35, %34, %cst_23 {dimension_numbers = #tpu.dot_dimension_numbers<[1], [0], [0], [1], [0, 0, 1, 1], [], []>} : vector<8x32xbf16>, vector<32x128xbf16>, vector<8x128xf32> -> vector<8x128xf32>
    %37 = vector.broadcast %3 : vector<1x128xf32> to vector<8x128xf32>
    %38 = arith.addf %36, %37 : vector<8x128xf32>
    %cst_24 = arith.constant 0.000000e+00 : f32
    %39 = vector.broadcast %cst_24 : f32 to vector<8x128xf32>
    %40 = arith.maximumf %38, %39 : vector<8x128xf32>
    %c0_25 = arith.constant 0 : index
    %c0_26 = arith.constant 0 : index
    %41 = vector.load %arg7[%c0_25, %c0_26] : memref<128x256xbf16, #tpu.memory_space<vmem>>, vector<128x256xbf16>
    %42 = arith.truncf %40 : vector<8x128xf32> to vector<8x128xbf16>
    %cst_27 = arith.constant dense<0.000000e+00> : vector<8x256xf32>
    %43 = tpu.matmul %42, %41, %cst_27 {dimension_numbers = #tpu.dot_dimension_numbers<[1], [0], [0], [1], [0, 0, 1, 1], [], []>} : vector<8x128xbf16>, vector<128x256xbf16>, vector<8x256xf32> -> vector<8x256xf32>
    %44 = vector.broadcast %4 : vector<1x256xf32> to vector<8x256xf32>
    %45 = arith.addf %43, %44 : vector<8x256xf32>
    %cst_28 = arith.constant 0.000000e+00 : f32
    %46 = vector.broadcast %cst_28 : f32 to vector<8x256xf32>
    %47 = arith.maximumf %45, %46 : vector<8x256xf32>
    %c0_29 = arith.constant 0 : index
    %c0_30 = arith.constant 0 : index
    %48 = vector.load %arg8[%c0_29, %c0_30] : memref<256x1024xbf16, #tpu.memory_space<vmem>>, vector<256x1024xbf16>
    %49 = arith.truncf %47 : vector<8x256xf32> to vector<8x256xbf16>
    %cst_31 = arith.constant dense<0.000000e+00> : vector<8x1024xf32>
    %50 = tpu.matmul %49, %48, %cst_31 {dimension_numbers = #tpu.dot_dimension_numbers<[1], [0], [0], [1], [0, 0, 1, 1], [], []>} : vector<8x256xbf16>, vector<256x1024xbf16>, vector<8x1024xf32> -> vector<8x1024xf32>
    %51 = vector.broadcast %5 : vector<1x1024xf32> to vector<8x1024xf32>
    %52 = arith.addf %50, %51 : vector<8x1024xf32>
    %53 = arith.negf %52 : vector<8x1024xf32>
    %54 = math.exp %53 : vector<8x1024xf32>
    %cst_32 = arith.constant 1.000000e+00 : f32
    %55 = vector.broadcast %cst_32 : f32 to vector<8x1024xf32>
    %56 = arith.addf %55, %54 : vector<8x1024xf32>
    %57 = arith.divf %55, %56 : vector<8x1024xf32>
    %58 = vector.extract_strided_slice %57 {offsets = [0, 0], sizes = [8, 978], strides = [1, 1]} : vector<8x1024xf32> to vector<8x978xf32>
    %c0_33 = arith.constant 0 : index
    %c0_34 = arith.constant 0 : index
    %59 = vector.load %arg10[%c0_33, %c0_34] : memref<8x978xf32, #tpu.memory_space<vmem>>, vector<8x978xf32>
    tpu.vector_store %arg10[%c0_33, %c0_34], %58 {strides = array<i32>} : memref<8x978xf32, #tpu.memory_space<vmem>>, vector<8x978xf32>,
    %c0_35 = arith.constant 0 : index
    %c0_36 = arith.constant 0 : index
    %60 = vector.load %arg11[%c0_35, %c0_36] : memref<8x128xf32, #tpu.memory_space<vmem>>, vector<8x128xf32>
    tpu.vector_store %arg11[%c0_35, %c0_36], %25 {strides = array<i32>} : memref<8x128xf32, #tpu.memory_space<vmem>>, vector<8x128xf32>,
    return
  }
  func.func @transform_0(%arg0: i32) -> (i32, i32) {
    %c0_i32 = arith.constant 0 : i32
    %c0_i32_0 = arith.constant 0 : i32
    return %arg0, %c0_i32 : i32, i32
  }
  func.func @transform_1(%arg0: i32) -> (i32, i32) {
    %c0_i32 = arith.constant 0 : i32
    %c0_i32_0 = arith.constant 0 : i32
    return %arg0, %c0_i32 : i32, i32
  }
  func.func @transform_2(%arg0: i32) -> (i32, i32) {
    %c0_i32 = arith.constant 0 : i32
    %c0_i32_0 = arith.constant 0 : i32
    %c0_i32_1 = arith.constant 0 : i32
    return %c0_i32, %c0_i32_0 : i32, i32
  }
  func.func @transform_3(%arg0: i32) -> (i32, i32) {
    %c0_i32 = arith.constant 0 : i32
    %c0_i32_0 = arith.constant 0 : i32
    %c0_i32_1 = arith.constant 0 : i32
    return %c0_i32, %c0_i32_0 : i32, i32
  }
  func.func @transform_4(%arg0: i32) -> (i32, i32) {
    %c0_i32 = arith.constant 0 : i32
    %c0_i32_0 = arith.constant 0 : i32
    %c0_i32_1 = arith.constant 0 : i32
    return %c0_i32, %c0_i32_0 : i32, i32
  }
  func.func @transform_5(%arg0: i32) -> (i32, i32) {
    %c0_i32 = arith.constant 0 : i32
    %c0_i32_0 = arith.constant 0 : i32
    %c0_i32_1 = arith.constant 0 : i32
    return %c0_i32, %c0_i32_0 : i32, i32
  }
  func.func @transform_6(%arg0: i32) -> (i32, i32) {
    %c0_i32 = arith.constant 0 : i32
    %c0_i32_0 = arith.constant 0 : i32
    %c0_i32_1 = arith.constant 0 : i32
    return %c0_i32, %c0_i32_0 : i32, i32
  }
  func.func @transform_7(%arg0: i32) -> (i32, i32) {
    %c0_i32 = arith.constant 0 : i32
    %c0_i32_0 = arith.constant 0 : i32
    %c0_i32_1 = arith.constant 0 : i32
    return %c0_i32, %c0_i32_0 : i32, i32
  }
  func.func @transform_8(%arg0: i32) -> (i32, i32) {
    %c0_i32 = arith.constant 0 : i32
    %c0_i32_0 = arith.constant 0 : i32
    %c0_i32_1 = arith.constant 0 : i32
    return %c0_i32, %c0_i32_0 : i32, i32
  }
  func.func @transform_9(%arg0: i32) -> (i32, i32) {
    %c0_i32 = arith.constant 0 : i32
    %c0_i32_0 = arith.constant 0 : i32
    return %arg0, %c0_i32 : i32, i32
  }
  func.func @transform_10(%arg0: i32) -> (i32, i32) {
    %c0_i32 = arith.constant 0 : i32
    %c0_i32_0 = arith.constant 0 : i32
    return %arg0, %c0_i32 : i32, i32
  }
}

</mosaic_0001>

<bundles_post_ra>
// kernel: vae_forward.1
= control target key start
LH: loop header
LB: loop body
LE: loop exit
PB: predicated region body
PF: predicated region fallthrough
CT: control target
= control target key end

     0   :  { %16 = vsyncpa [#allocation3], 0  ;;  %s4410_s0 = inlined_call_operand.vmem [shape: f32[32,1024], index: 0, kind: input, shape index: {}]   ;;  %s4411_s1 = inlined_call_operand.vmem [shape: f32[32,32], index: 1, kind: input, shape index: {}]   ;;  %s4412_s2 = inlined_call_operand.hbm [shape: bf16[1024,256], index: 2, kind: input, shape index: {}]   ;;  %s4413_s3 = inlined_call_operand.vmem [shape: bf16[256,128], index: 3, kind: input, shape index: {}]   ;;  %s4414_s4 = inlined_call_operand.vmem [shape: bf16[128,128], index: 4, kind: input, shape index: {}]   ;;  %s4415_s5 = inlined_call_operand.vmem [shape: bf16[32,128], index: 5, kind: input, shape index: {}]   ;;  %s4416_s6 = inlined_call_operand.vmem [shape: bf16[128,256], index: 6, kind: input, shape index: {}]   ;;  %s4417_s7 = inlined_call_operand.hbm [shape: bf16[256,1024], index: 7, kind: input, shape index: {}]   ;;  %s4418_s8 = inlined_call_operand.vmem [shape: f32[8,1024], index: 8, kind: input, shape index: {}]   ;;  %s4419_s9 = inlined_call_operand.hbm [shape: f32[32,978], index: 9, kind: output, shape index: {0}]   ;;  %s4420_s10 = inlined_call_operand.vmem [shape: f32[32,128], index: 10, kind: output, shape index: {1}]  }
   0x1   :  { %17 = vsyncpa [#allocation6], 0 }
   0x2   :  { %18 = vsyncpa [#allocation4], 0 }
   0x3   :  { %20 = vsyncpa [#allocation4 + $0x1], 0  ;;  %s4003_s13 = smov 0   ;;  %s4005_s14 = smov 0  }
   0x4   :  { %s4007_s15 = smov 0   ;;  %s4009_s16 = smov 0  }
   0x5 LB: > { %4428 = sst [smem:[#allocation11_spill]] %s3931_s15  ;;  %s4024_s17 = sadd.s32 4294967295, %s3935_s16   ;;  %s3935_s16 = sphi %s4009_s16, %s4444_s16   ;;  %s3931_s15 = sphi %s4007_s15, %s4446_s15   ;;  %s3927_s14 = sphi %s4005_s14, %s4448_s14   ;;  %s3923_s13 = sphi %s4003_s13, %s4447_s13  }
   0x6   : > { %s3059_s18 = sadd.s32 4294967294, %s3935_s16   ;;  %s4028_s19 = sadd.s32 1, %s3935_s16  }
   0x7   : > { %4429 = sst [smem:[#allocation12_spill]] %s4028_s19  ;;  %s232_s20 = sadd.s32 1, %s3931_s15 }
   0x8   : > { %s229_s21 = ssub.s32 %s3935_s16, %s4028_s19  ;;  %p242_p0 = scmp.ne.s32.totalorder %s3931_s15, %s3927_s14 }
   0x9   : > { %p230_p1 = scmp.eq.s32.totalorder %s229_s21, 0  ;;  %p243_p2 = scmp.eq.s32.totalorder %s4024_s17, 3 }
   0xa   : > { %p248_p3 = scmp.ne.s32.totalorder %s3927_s14, %s3923_s13  ;;  %p249_p4 = scmp.eq.s32.totalorder %s3059_s18, 3 }
   0xb   : > { %s4039_s22 = scalar_select %p230_p1, %s3931_s15, %s232_s20  }
   0xc   : > { %p4041_p5 = por %p243_p2, %p242_p0  ;;  %p4045_p6 = por %p249_p4, %p248_p3 }
   0xd   : > { %4430 = sst [smem:[#allocation13_spill]] %s4039_s22  ;;  %p3060_p7 = scmp.ge.s32.totalorder %s3935_s16, 1 }
   0xe   : > { %s4431_s23 = scalar_select %p4041_p5, 1, 0 }
   0xf   : > { %s4432_s24 = scalar_select %p4045_p6, 1, 0 }
  0x10   : > { %p282_p8 = scmp.lt.s32.totalorder %s3935_s16, 5  ;;  %p4421_p9 = scmp.eq.s32.totalorder %s4024_s17, 0 }
  0x11   : > { %4433 = sst [smem:[#allocation14_spill]] %s4432_s24  ;;  %s3937_s26 = smov [#allocation2]  }
  0x12   : > { %p4052_p10 = pnand %p3060_p7, %p282_p8  ;;  %s294_s27 = sshll.u32 %s3937_s26, 4  ;;  %s295_s27 = int_to_ptr.vmem [resolvable:$true] %s294_s27 }
  0x13   : > { %s3938_s29 = smov [#allocation5]   ;;  %s3809_s18 = scalar_lea.hbm %s4412_s2, 16384 }
  0x14   : > { %s4434_s25 = scalar_select %p4052_p10, 1, 0 }
  0x15   : > { %p3475_p11 = pneg %p4052_p10  ;;  %s319_s30 = sshll.u32 %s3938_s29, 4  ;;  %s4064_s30 = int_to_ptr.vmem [resolvable:$true] %s319_s30 }
  0x16   : > { %p3810_p13 = scmp.ne.s32.totalorder %s4412_s2, %s3809_s18  ;;  %p3816_p3 = scmp.lt.u32.totalorder %s3809_s18, %s4412_s2 }
  0x17   : > { %p4060_p12 = pnand %p4421_p9, %p3475_p11 }
  0x19   : > { %p3811_p0 = pneg %p4060_p12 }
  0x1b   : > { %p3812_p1 = pnand %p3811_p0, %p3810_p13 }
  0x1d   : > { %p3813_p2 = pneg %p3812_p1 }
  0x1f   : > { %p3818_p4 = pnand %p3816_p3, %p3813_p2 }
  0x21   : > { %3821 = shalt.err (!%p3818_p4)
}
  0x22   : > { %s3822_s29 = scalar_lea.vmem %s295_s27, 16384  ;;  %p3830_p9 = scmp.lt.s32.totalorder %s295_s27, %s295_s27 }
  0x23   : > { %p3823_p7 = scmp.ne.s32.totalorder %s295_s27, %s3822_s29  ;;  %p3831_p6 = scmp.lt.s32.totalorder %s3822_s29, %s3822_s29 }
  0x25   : > { %p3825_p8 = pnand %p3823_p7, %p3811_p0  ;;  %p3832_p5 = por %p3831_p6, %p3830_p9 }
  0x27   : > { %p3826_p11 = pneg %p3825_p8 }
  0x29   : > { %p3833_p10 = pnand %p3832_p5, %p3826_p11 }
  0x2b   : > { %3836 = shalt.err (!%p3833_p10)
}
  0x2c   : > { %s3939_s11 = smov 128   ;;  %s3940_s12 = smov 8  }
  0x2d   : > { %3478 = dma.hbm_to_vmem [thread:$0]  (!%p4060_p12), %s4412_s2, 16384, %s295_s27, [#allocation3], %s3939_s11, %s3939_s11, %s3940_s12  }
  0x2e   : > { %s3837_s26 = scalar_lea.hbm %s4417_s7, 16384 }
  0x2f   : > { %p3838_p13 = scmp.ne.s32.totalorder %s4417_s7, %s3837_s26  ;;  %p3844_p9 = scmp.lt.u32.totalorder %s3837_s26, %s4417_s7 }
  0x31   : > { %p3840_p5 = pnand %p3838_p13, %p3811_p0 }
  0x33   : > { %p3841_p6 = pneg %p3840_p5 }
  0x35   : > { %p3846_p10 = pnand %p3844_p9, %p3841_p6 }
  0x37   : > { %3849 = shalt.err (!%p3846_p10)
}
  0x38   : > { %s3850_s27 = scalar_lea.vmem %s4064_s30, 16384  ;;  %p3858_p4 = scmp.lt.s32.totalorder %s4064_s30, %s4064_s30 }
  0x39   : > { %p3851_p1 = scmp.ne.s32.totalorder %s4064_s30, %s3850_s27  ;;  %p3859_p7 = scmp.lt.s32.totalorder %s3850_s27, %s3850_s27 }
  0x3b   : > { %p3853_p2 = pnand %p3851_p1, %p3811_p0  ;;  %p3860_p8 = por %p3859_p7, %p3858_p4 }
  0x3d   : > { %p3854_p3 = pneg %p3853_p2 }
  0x3f   : > { %p3861_p11 = pnand %p3860_p8, %p3854_p3 }
  0x41   : > { %3864 = shalt.err (!%p3861_p11)
}
  0x42   : > { %s3941_s15 = smov 512   ;;  %s3942_s19 = smov 32  }
  0x43   : > { %3481 = dma.hbm_to_vmem [thread:$0]  (!%p4060_p12), %s4417_s7, 16384, %s4064_s30, [#allocation6], %s3941_s15, %s3941_s15, %s3942_s19  }
  0x44   : > { %p4436_p13 = scmp.ne.s32.totalorder %s4434_s25, 0 }
  0x45   : > { %p4437_p0 = scmp.eq.s32.totalorder (!%p4436_p13), %s4024_s17, 0 }
  0x46   : > { %353 = sbr.rel (%p4436_p13) target bundleno = 1950 (0x79e), region = 56 }
  0x4d   : > { %3910 = dma.done.wait (%p4437_p0), [#allocation3], 16384   ;;  %p4438_p5 = pmov %p4437_p0 }
  0x4e   : > { %p4439_p6 = pmov %p4437_p0 }
  0x4f   : > { %3912 = vsyncadd (%p4438_p5), [#allocation3], 4294950912 }
  0x50   : > { %3914 = dma.done.wait (%p4439_p6), [#allocation6], 16384   ;;  %p4440_p9 = pmov %p4437_p0 }
  0x51   : > { %v3533_v0 = vld [vmem:[#allocation2 + $0x4] ss:$8 sps:$4 sm:$0xff]   ;;  %v3535_v1 = vld [vmem:[#allocation2] ss:$8 sps:$4 sm:$0xff]   ;;  %v3536_v2 = vld [vmem:[#allocation2 + $0x14] ss:$8 sps:$4 sm:$0xff]  }
  0x52   : > { %3916 = vsyncadd (%p4440_p9), [#allocation6], 4294950912  ;;  %1222 = vmatprep.subr.bf16.mxu0 %v3533_v0  ;;  %v3538_v3 = vld [vmem:[#allocation2 + $0x10] ss:$8 sps:$4 sm:$0xff]   ;;  %v3539_v4 = vld [vmem:[#allocation2 + $0x24] ss:$8 sps:$4 sm:$0xff]  }
  0x53   : > { %1223 = vmatpush1.bf16.msra.mxu0 %v3535_v1  ;;  %v3541_v5 = vld [vmem:[#allocation2 + $0x20] ss:$8 sps:$4 sm:$0xff]   ;;  %p403_p12 = scmp.lt.s32.totalorder %s4024_s17, 3  ;;  %v3542_v6 = vld [vmem:[#allocation2 + $0x34] ss:$8 sps:$4 sm:$0xff]   ;;  %vm3944_vm0 = vmmov 0  }
  0x54   : > { %1224 = vmatprep.subr.bf16.mxu0 %v3536_v2  ;;  %v3544_v7 = vld [vmem:[#allocation2 + $0x30] ss:$8 sps:$4 sm:$0xff]   ;;  %v3545_v8 = vld [vmem:[#allocation2 + $0x44] ss:$8 sps:$4 sm:$0xff]   ;;  %v3547_v9 = vld [vmem:[#allocation2 + $0x40] ss:$8 sps:$4 sm:$0xff]  }
  0x55   : > { %s4125_s25 = scalar_select %p403_p12, %s4024_s17, 3  ;;  %v3548_v10 = vld [vmem:[#allocation2 + $0x54] ss:$8 sps:$4 sm:$0xff]   ;;  %v3550_v11 = vld [vmem:[#allocation2 + $0x50] ss:$8 sps:$4 sm:$0xff]   ;;  %vm1691_vm1 = vcmask 261120  }
  0x56   : > { %v3551_v12 = vld [vmem:[#allocation2 + $0x64] ss:$8 sps:$4 sm:$0xff]   ;;  %v3553_v15 = vld [vmem:[#allocation2 + $0x60] ss:$8 sps:$4 sm:$0xff]   ;;  %v3554_v16 = vld [vmem:[#allocation2 + $0x74] ss:$8 sps:$4 sm:$0xff]  }
  0x57   : > { %1225 = vmatpush1.bf16.msra.mxu0 %v3538_v3  ;;  %s3387_s28 = sshll.u32 %s4125_s25, 6  ;;  %v3556_v17 = vld [vmem:[#allocation2 + $0x70] ss:$8 sps:$4 sm:$0xff]   ;;  %v3557_v18 = vld [vmem:[#allocation2 + $0x84] ss:$8 sps:$4 sm:$0xff]   ;;  %s3070_s18 = sshll.u32 %s4125_s25, 3 }
  0x58   : > { %1226 = vmatprep.subr.bf16.mxu0 %v3539_v4  ;;  %s4131_s22 = scalar_lea.vmem %s4410_s0, %s3387_s28  ;;  %v3559_v19 = vld [vmem:[#allocation2 + $0x80] ss:$8 sps:$4 sm:$0xff]   ;;  %v3560_v20 = vld [vmem:[#allocation2 + $0x94] ss:$8 sps:$4 sm:$0xff]   ;;  %v3562_v21 = vld [vmem:[#allocation2 + $0x90] ss:$8 sps:$4 sm:$0xff]   ;;  %s411_s30 = scalar_lea.vmem %s4411_s1, %s3070_s18 }
  0x59   : > { %v428_v13 = vld [vmem:[%s4131_s22 + $0x8] sm:$0xff]  ;;  %v3566_v24 = vld [vmem:[#allocation2 + $0xb4] ss:$8 sps:$4 sm:$0xff]   ;;  %v3568_v25 = vld [vmem:[#allocation2 + $0xb0] ss:$8 sps:$4 sm:$0xff]   ;;  %s3945_s24 = smov 96  }
  0x5a   : > { %v564_v14 = vpack.c.bf16 %v428_v13, %v428_v13  ;;  %v3563_v22 = vld [vmem:[#allocation2 + $0xa4] ss:$8 sps:$4 sm:$0xff]   ;;  %v3565_v23 = vld [vmem:[#allocation2 + $0xa0] ss:$8 sps:$4 sm:$0xff]   ;;  %v3572_v28 = vld [vmem:[#allocation2 + $0xd4] ss:$8 sps:$4 sm:$0xff]  }
  0x5b   : > { %1227 = vmatpush1.bf16.msra.mxu0 %v3541_v5  ;;  %v3569_v26 = vld [vmem:[#allocation2 + $0xc4] ss:$8 sps:$4 sm:$0xff]   ;;  %v3571_v27 = vld [vmem:[#allocation2 + $0xc0] ss:$8 sps:$4 sm:$0xff]   ;;  %v3574_v29 = vld [vmem:[#allocation2 + $0xd0] ss:$8 sps:$4 sm:$0xff]  }
  0x5c   : > { %1228 = vmatprep.subr.bf16.mxu0 %v3542_v6  ;;  %1254 = vmatprep.mubr.bf16.mxu0 %v564_v14  ;;  %v3575_v30 = vld [vmem:[#allocation2 + $0xe4] ss:$8 sps:$4 sm:$0xff]   ;;  %v3577_v31 = vld [vmem:[#allocation2 + $0xe0] ss:$8 sps:$4 sm:$0xff]   ;;  %v3578_v32 = vld [vmem:[#allocation2 + $0xf4] ss:$8 sps:$4 sm:$0xff]  }
  0x5d   : > { %v3580_v33 = vld [vmem:[#allocation2 + $0xf0] ss:$8 sps:$4 sm:$0xff]   ;;  %v3583_v34 = vld [vmem:[#allocation2 + $0x104] ss:$8 sps:$4 sm:$0xff]   ;;  %v3581_v38 = vld [vmem:[#allocation2 + $0x100] ss:$8 sps:$4 sm:$0xff]  }
  0x5e   : > { %v427_v35 = vld [vmem:[%s4131_s22] sm:$0xff]  ;;  %v430_v36 = vld [vmem:[%s4131_s22 + $0x18] sm:$0xff]  ;;  %v429_v6 = vld [vmem:[%s4131_s22 + $0x10] sm:$0xff]  ;;  %s394_s15 = sand.u32 1, %s3927_s14   ;;  %vm2917_vm2 = vcmask 670720   ;;  %p4441_p1 = scmp.ne.s32.totalorder %s4431_s23, 0 }
  0x5f   : > { %1229 = vmatpush1.bf16.msra.mxu0 %v3544_v7  ;;  %v563_v37 = vpack.c.bf16 %v427_v35, %v427_v35  ;;  %v566_v39 = vpack.c.bf16 %v430_v36, %v430_v36  ;;  %v3586_v40 = vld [vmem:[#allocation2 + $0x114] ss:$8 sps:$4 sm:$0xff]   ;;  %v3584_v41 = vld [vmem:[#allocation2 + $0x110] ss:$8 sps:$4 sm:$0xff]   ;;  %v3589_v42 = vld [vmem:[#allocation2 + $0x124] ss:$8 sps:$4 sm:$0xff]  }
  0x60   : > { %1230 = vmatprep.subr.bf16.mxu0 %v3545_v8  ;;  %v3587_v43 = vld [vmem:[#allocation2 + $0x120] ss:$8 sps:$4 sm:$0xff]   ;;  %v3592_v44 = vld [vmem:[#allocation2 + $0x134] ss:$8 sps:$4 sm:$0xff]   ;;  %v3590_v45 = vld [vmem:[#allocation2 + $0x130] ss:$8 sps:$4 sm:$0xff]  }
  0x61   : > { %v3595_v46 = vld [vmem:[#allocation2 + $0x144] ss:$8 sps:$4 sm:$0xff]   ;;  %v3593_v47 = vld [vmem:[#allocation2 + $0x140] ss:$8 sps:$4 sm:$0xff]   ;;  %v3598_v48 = vld [vmem:[#allocation2 + $0x154] ss:$8 sps:$4 sm:$0xff]  }
  0x62   : > { %v3596_v49 = vld [vmem:[#allocation2 + $0x150] ss:$8 sps:$4 sm:$0xff]   ;;  %v3601_v50 = vld [vmem:[#allocation2 + $0x164] ss:$8 sps:$4 sm:$0xff]   ;;  %v3599_v51 = vld [vmem:[#allocation2 + $0x160] ss:$8 sps:$4 sm:$0xff]  }
  0x63   : > { %1231 = vmatpush1.bf16.msra.mxu0 %v3547_v9  ;;  %v3604_v52 = vld [vmem:[#allocation2 + $0x174] ss:$8 sps:$4 sm:$0xff]   ;;  %v3602_v53 = vld [vmem:[#allocation2 + $0x170] ss:$8 sps:$4 sm:$0xff]   ;;  %v3607_v54 = vld [vmem:[#allocation2 + $0x184] ss:$8 sps:$4 sm:$0xff]   ;;  %v565_v9 = vpack.c.bf16 %v429_v6, %v429_v6 }
  0x64   : > { %1232 = vmatprep.subr.bf16.mxu0 %v3548_v10  ;;  %v3605_v55 = vld [vmem:[#allocation2 + $0x180] ss:$8 sps:$4 sm:$0xff]   ;;  %v3610_v56 = vld [vmem:[#allocation2 + $0x194] ss:$8 sps:$4 sm:$0xff]   ;;  %v3608_v57 = vld [vmem:[#allocation2 + $0x190] ss:$8 sps:$4 sm:$0xff]  }
  0x65   : > { %v3613_v58 = vld [vmem:[#allocation2 + $0x1a4] ss:$8 sps:$4 sm:$0xff]   ;;  %v3611_v59 = vld [vmem:[#allocation2 + $0x1a0] ss:$8 sps:$4 sm:$0xff]   ;;  %v3616_v60 = vld [vmem:[#allocation2 + $0x1b4] ss:$8 sps:$4 sm:$0xff]  }
  0x66   : > { %v3614_v61 = vld [vmem:[#allocation2 + $0x1b0] ss:$8 sps:$4 sm:$0xff]   ;;  %v3619_v62 = vld [vmem:[#allocation2 + $0x1c4] ss:$8 sps:$4 sm:$0xff]   ;;  %v3617_v63 = vld [vmem:[#allocation2 + $0x1c0] ss:$8 sps:$4 sm:$0xff]  }
  0x67   : > { %1233 = vmatpush1.bf16.msra.mxu0 %v3550_v11  ;;  %v3622_v0 = vld [vmem:[#allocation2 + $0x1d4] ss:$8 sps:$4 sm:$0xff]   ;;  %v3620_v1 = vld [vmem:[#allocation2 + $0x1d0] ss:$8 sps:$4 sm:$0xff]   ;;  %v3625_v2 = vld [vmem:[#allocation2 + $0x1e4] ss:$8 sps:$4 sm:$0xff]  }
  0x68   : > { %1234 = vmatprep.subr.bf16.mxu0 %v3551_v12  ;;  %v3623_v3 = vld [vmem:[#allocation2 + $0x1e0] ss:$8 sps:$4 sm:$0xff]   ;;  %v3628_v4 = vld [vmem:[#allocation2 + $0x1f4] ss:$8 sps:$4 sm:$0xff]   ;;  %v3626_v5 = vld [vmem:[#allocation2 + $0x1f0] ss:$8 sps:$4 sm:$0xff]  }
  0x69   : > { %v3631_v7 = vld [vmem:[#allocation2 + $0x204] ss:$8 sps:$4 sm:$0xff]   ;;  %v3629_v10 = vld [vmem:[#allocation2 + $0x200] ss:$8 sps:$4 sm:$0xff]   ;;  %v3634_v12 = vld [vmem:[#allocation2 + $0x214] ss:$8 sps:$4 sm:$0xff]  }
  0x6a   : > { %v432_v8 = vld [vmem:[%s4131_s22 + $0x28] sm:$0xff]  ;;  %v3725_v13 = vld [vmem:[%s4413_s3 + $0x40] sm:$0xff]   ;;  %v3652_v36 = vld [vmem:[#allocation2 + $0x274] ss:$8 sps:$4 sm:$0xff]   ;;  %s3067_s25 = sshll.u32 %s394_s15, 6  ;;  %s2921_s20 = scalar_lea.sflag [#allocation4], %s394_s15 }
  0x6b   : > { %1235 = vmatpush1.bf16.msra.mxu0 %v3553_v15  ;;  %v568_v11 = vpack.c.bf16 %v432_v8, %v432_v8  ;;  %v3726_v14 = vld [vmem:[%s4413_s3] sm:$0xff]   ;;  %v3727_v15 = vld [vmem:[%s4413_s3 + $0x48] sm:$0xff]   ;;  %3389 = vmatprep.subr.bf16.mxu1 %v3725_v13  ;;  %v3700_v8 = vld [vmem:[#allocation2 + $0x374] ss:$8 sps:$4 sm:$0xff]   ;;  %s4343_s19 = scalar_lea.vmem [#allocation7], %s3067_s25 }
  0x6c   : > { %1236 = vmatprep.subr.bf16.mxu0 %v3554_v16  ;;  %v3632_v16 = vld [vmem:[#allocation2 + $0x210] ss:$8 sps:$4 sm:$0xff]   ;;  %3390 = vmatpush3.bf16.msra.mxu1 %v3726_v14  ;;  %v3647_v35 = vld [vmem:[#allocation2 + $0x260] ss:$8 sps:$4 sm:$0xff]   ;;  %v3697_v6 = vld [vmem:[#allocation2 + $0x364] ss:$8 sps:$4 sm:$0xff]  }
  0x6d   : > { %3391 = vmatprep.subr.bf16.mxu1 %v3727_v15  ;;  %v3704_v13 = vld [vmem:[#allocation2 + $0x390] ss:$8 sps:$4 sm:$0xff]   ;;  %v3709_v14 = vld [vmem:[#allocation2 + $0x3a4] ss:$8 sps:$4 sm:$0xff]   ;;  %v3707_v15 = vld [vmem:[#allocation2 + $0x3a0] ss:$8 sps:$4 sm:$0xff]  }
  0x6e   : > { %s2939_s11 = sshll.u32 %s4343_s19, 4  ;;  %s4366_s11 = int_to_ptr.vmem [resolvable:$true] %s2939_s11 }
  0x6f   : > { %1237 = vmatpush1.bf16.msra.mxu0 %v3556_v17  ;;  %v3637_v17 = vld [vmem:[#allocation2 + $0x224] ss:$8 sps:$4 sm:$0xff]   ;;  %s3865_s21 = scalar_lea.vmem %s4366_s11, 1024 }
  0x70   : > { %1238 = vmatprep.subr.bf16.mxu0 %v3557_v18  ;;  %v3728_v18 = vld [vmem:[%s4413_s3 + $0x8] sm:$0xff]   ;;  %p3866_p10 = scmp.ne.s32.totalorder %s4366_s11, %s3865_s21 }
  0x71   : > { %3392 = vmatpush3.bf16.msra.mxu1 %v3728_v18  ;;  %v3715_v18 = vld [vmem:[#allocation2 + $0x3c4] ss:$8 sps:$4 sm:$0xff]  }
  0x72   : > { %p3867_p2 = pnand %p3866_p10, %p4441_p1 }
  0x73   : > { %1239 = vmatpush1.bf16.msra.mxu0 %v3559_v19  ;;  %v3729_v19 = vld [vmem:[%s4413_s3 + $0x50] sm:$0xff]  }
  0x74   : > { %1240 = vmatprep.subr.bf16.mxu0 %v3560_v20  ;;  %v3635_v20 = vld [vmem:[#allocation2 + $0x220] ss:$8 sps:$4 sm:$0xff]   ;;  %3393 = vmatprep.subr.bf16.mxu1 %v3729_v19  ;;  %p3868_p3 = pneg %p3867_p2 }
  0x75   : > { %v3713_v19 = vld [vmem:[#allocation2 + $0x3c0] ss:$8 sps:$4 sm:$0xff]  }
  0x77   : > { %1241 = vmatpush1.bf16.msra.mxu0 %v3562_v21  ;;  %v3640_v21 = vld [vmem:[#allocation2 + $0x234] ss:$8 sps:$4 sm:$0xff]  }
  0x78   : > { %1242 = vmatprep.subr.bf16.mxu0 %v3563_v22  ;;  %v3730_v22 = vld [vmem:[%s4413_s3 + $0x10] sm:$0xff]  }
  0x79   : > { %3394 = vmatpush3.bf16.msra.mxu1 %v3730_v22  ;;  %v3721_v22 = vld [vmem:[#allocation2 + $0x3e4] ss:$8 sps:$4 sm:$0xff]  }
  0x7b   : > { %1243 = vmatpush1.bf16.msra.mxu0 %v3565_v23  ;;  %v3731_v23 = vld [vmem:[%s4413_s3 + $0x58] sm:$0xff]  }
  0x7c   : > { %1244 = vmatprep.subr.bf16.mxu0 %v3566_v24  ;;  %v3638_v24 = vld [vmem:[#allocation2 + $0x230] ss:$8 sps:$4 sm:$0xff]   ;;  %3395 = vmatprep.subr.bf16.mxu1 %v3731_v23  ;;  %v3719_v23 = vld [vmem:[#allocation2 + $0x3e0] ss:$8 sps:$4 sm:$0xff]  }
  0x7f   : > { %1245 = vmatpush1.bf16.msra.mxu0 %v3568_v25  ;;  %v3643_v25 = vld [vmem:[#allocation2 + $0x244] ss:$8 sps:$4 sm:$0xff]  }
  0x80   : > { %1246 = vmatprep.subr.bf16.mxu0 %v3569_v26  ;;  %v3732_v26 = vld [vmem:[%s4413_s3 + $0x18] sm:$0xff]  }
  0x81   : > { %3396 = vmatpush3.bf16.msra.mxu1 %v3732_v26  ;;  %v433_v26 = vld [vmem:[%s4131_s22 + $0x30] sm:$0xff] }
  0x83   : > { %1247 = vmatpush1.bf16.msra.mxu0 %v3571_v27  ;;  %v3733_v27 = vld [vmem:[%s4413_s3 + $0x60] sm:$0xff]  }
  0x84   : > { %1248 = vmatprep.subr.bf16.mxu0 %v3572_v28  ;;  %v3641_v28 = vld [vmem:[#allocation2 + $0x240] ss:$8 sps:$4 sm:$0xff]   ;;  %3397 = vmatprep.subr.bf16.mxu1 %v3733_v27  ;;  %v569_v27 = vpack.c.bf16 %v433_v26, %v433_v26  ;;  %v3760_v26 = vld [vmem:[%s4416_s6 + $0x30] ss:$8 sps:$4 sm:$0xff]  }
  0x87   : > { %1249 = vmatpush1.bf16.msra.mxu0 %v3574_v29  ;;  %v3646_v29 = vld [vmem:[#allocation2 + $0x254] ss:$8 sps:$4 sm:$0xff]  }
  0x88   : > { %1250 = vmatprep.subr.bf16.mxu0 %v3575_v30  ;;  %v3734_v30 = vld [vmem:[%s4413_s3 + $0x20] sm:$0xff]  }
  0x89   : > { %3398 = vmatpush3.bf16.msra.mxu1 %v3734_v30  ;;  %v3739_v30 = vld [vmem:[%s4413_s3 + $0x78] sm:$0xff]  }
  0x8b   : > { %1251 = vmatpush1.bf16.msra.mxu0 %v3577_v31  ;;  %v3735_v31 = vld [vmem:[%s4413_s3 + $0x68] sm:$0xff]  }
  0x8c   : > { %1252 = vmatprep.subr.bf16.mxu0 %v3578_v32  ;;  %v3644_v32 = vld [vmem:[#allocation2 + $0x250] ss:$8 sps:$4 sm:$0xff]   ;;  %3399 = vmatprep.subr.bf16.mxu1 %v3735_v31 }
  0x8d   : > { %v3740_v31 = vld [vmem:[%s4413_s3 + $0x38] sm:$0xff]  }
  0x8f   : > { %1253 = vmatpush1.bf16.msra.mxu0 %v3580_v33  ;;  %v3649_v33 = vld [vmem:[#allocation2 + $0x264] ss:$8 sps:$4 sm:$0xff]  }
  0x90   : > { %1263 = vmatprep.subr.bf16.mxu0 %v3583_v34  ;;  %v3736_v34 = vld [vmem:[%s4413_s3 + $0x28] sm:$0xff]  }
  0x91   : > { %3400 = vmatpush3.bf16.msra.mxu1 %v3736_v34 }
  0x92   : > { %1255 = vmatmul.mubr.bf16.vlgmr.msra.gmra.mrb[0].mxu0 %v563_v37  ;;  %v3650_v37 = vld [vmem:[#allocation2 + $0x270] ss:$8 sps:$4 sm:$0xff]  }
  0x93   : > { %1264 = vmatpush1.bf16.msra.mxu0 %v3581_v38  ;;  %1295 = vmatprep.mubr.bf16.mxu0 %v566_v39  ;;  %v3655_v38 = vld [vmem:[#allocation2 + $0x284] ss:$8 sps:$4 sm:$0xff]   ;;  %v3653_v39 = vld [vmem:[#allocation2 + $0x280] ss:$8 sps:$4 sm:$0xff]  }
  0x94   : > { %1265 = vmatprep.subr.bf16.mxu0 %v3586_v40  ;;  %v3658_v40 = vld [vmem:[#allocation2 + $0x294] ss:$8 sps:$4 sm:$0xff]  }
  0x97   : > { %1266 = vmatpush1.bf16.msra.mxu0 %v3584_v41  ;;  %v3656_v41 = vld [vmem:[#allocation2 + $0x290] ss:$8 sps:$4 sm:$0xff]  }
  0x98   : > { %1267 = vmatprep.subr.bf16.mxu0 %v3589_v42  ;;  %v3661_v42 = vld [vmem:[#allocation2 + $0x2a4] ss:$8 sps:$4 sm:$0xff]  }
  0x9b   : > { %1268 = vmatpush1.bf16.msra.mxu0 %v3587_v43  ;;  %v3659_v43 = vld [vmem:[#allocation2 + $0x2a0] ss:$8 sps:$4 sm:$0xff]  }
  0x9c   : > { %1269 = vmatprep.subr.bf16.mxu0 %v3592_v44  ;;  %v3664_v44 = vld [vmem:[#allocation2 + $0x2b4] ss:$8 sps:$4 sm:$0xff]  }
  0x9f   : > { %1270 = vmatpush1.bf16.msra.mxu0 %v3590_v45  ;;  %v3662_v45 = vld [vmem:[#allocation2 + $0x2b0] ss:$8 sps:$4 sm:$0xff]  }
  0xa0   : > { %1271 = vmatprep.subr.bf16.mxu0 %v3595_v46  ;;  %v3667_v46 = vld [vmem:[#allocation2 + $0x2c4] ss:$8 sps:$4 sm:$0xff]  }
  0xa3   : > { %1272 = vmatpush1.bf16.msra.mxu0 %v3593_v47  ;;  %v3665_v47 = vld [vmem:[#allocation2 + $0x2c0] ss:$8 sps:$4 sm:$0xff]  }
  0xa4   : > { %1273 = vmatprep.subr.bf16.mxu0 %v3598_v48  ;;  %v3670_v48 = vld [vmem:[#allocation2 + $0x2d4] ss:$8 sps:$4 sm:$0xff]  }
  0xa7   : > { %1274 = vmatpush1.bf16.msra.mxu0 %v3596_v49  ;;  %v3668_v49 = vld [vmem:[#allocation2 + $0x2d0] ss:$8 sps:$4 sm:$0xff]  }
  0xa8   : > { %1275 = vmatprep.subr.bf16.mxu0 %v3601_v50  ;;  %v3673_v50 = vld [vmem:[#allocation2 + $0x2e4] ss:$8 sps:$4 sm:$0xff]  }
  0xab   : > { %1276 = vmatpush1.bf16.msra.mxu0 %v3599_v51  ;;  %v3671_v51 = vld [vmem:[#allocation2 + $0x2e0] ss:$8 sps:$4 sm:$0xff]  }
  0xac   : > { %1277 = vmatprep.subr.bf16.mxu0 %v3604_v52  ;;  %v3676_v52 = vld [vmem:[#allocation2 + $0x2f4] ss:$8 sps:$4 sm:$0xff]  }
  0xaf   : > { %1278 = vmatpush1.bf16.msra.mxu0 %v3602_v53  ;;  %v3674_v53 = vld [vmem:[#allocation2 + $0x2f0] ss:$8 sps:$4 sm:$0xff]  }
  0xb0   : > { %1279 = vmatprep.subr.bf16.mxu0 %v3607_v54  ;;  %v431_v54 = vld [vmem:[%s4131_s22 + $0x20] sm:$0xff] }
  0xb3   : > { %1280 = vmatpush1.bf16.msra.mxu0 %v3605_v55  ;;  %v3679_v55 = vld [vmem:[#allocation2 + $0x304] ss:$8 sps:$4 sm:$0xff]  }
  0xb4   : > { %1281 = vmatprep.subr.bf16.mxu0 %v3610_v56  ;;  %v434_v56 = vld [vmem:[%s4131_s22 + $0x38] sm:$0xff]  ;;  %s415_s22 = scalar_lea.vmem %s4420_s10, %s3070_s18 }
  0xb7   : > { %1282 = vmatpush1.bf16.msra.mxu0 %v3608_v57  ;;  %v567_v57 = vpack.c.bf16 %v431_v54, %v431_v54  ;;  %v3745_v54 = vld [vmem:[%s4414_s4 + $0x20] sm:$0xff]  }
  0xb8   : > { %1283 = vmatprep.subr.bf16.mxu0 %v3613_v58  ;;  %v3677_v58 = vld [vmem:[#allocation2 + $0x300] ss:$8 sps:$4 sm:$0xff]  }
  0xbb   : > { %1284 = vmatpush1.bf16.msra.mxu0 %v3611_v59  ;;  %v570_v59 = vpack.c.bf16 %v434_v56, %v434_v56  ;;  %v3747_v56 = vld [vmem:[%s4414_s4 + $0x30] sm:$0xff]  }
  0xbc   : > { %1285 = vmatprep.subr.bf16.mxu0 %v3616_v60  ;;  %v3682_v60 = vld [vmem:[#allocation2 + $0x314] ss:$8 sps:$4 sm:$0xff]  }
  0xbf   : > { %1286 = vmatpush1.bf16.msra.mxu0 %v3614_v61  ;;  %v3680_v61 = vld [vmem:[#allocation2 + $0x310] ss:$8 sps:$4 sm:$0xff]  }
  0xc0   : > { %1287 = vmatprep.subr.bf16.mxu0 %v3619_v62  ;;  %v3685_v62 = vld [vmem:[#allocation2 + $0x324] ss:$8 sps:$4 sm:$0xff]  }
  0xc3   : > { %1288 = vmatpush1.bf16.msra.mxu0 %v3617_v63  ;;  %v3683_v63 = vld [vmem:[#allocation2 + $0x320] ss:$8 sps:$4 sm:$0xff]  }
  0xc4   : > { %1289 = vmatprep.subr.bf16.mxu0 %v3622_v0  ;;  %v3688_v0 = vld [vmem:[#allocation2 + $0x334] ss:$8 sps:$4 sm:$0xff]  }
  0xc7   : > { %1290 = vmatpush1.bf16.msra.mxu0 %v3620_v1  ;;  %v3686_v1 = vld [vmem:[#allocation2 + $0x330] ss:$8 sps:$4 sm:$0xff]  }
  0xc8   : > { %1291 = vmatprep.subr.bf16.mxu0 %v3625_v2  ;;  %v3691_v2 = vld [vmem:[#allocation2 + $0x344] ss:$8 sps:$4 sm:$0xff]  }
  0xcb   : > { %1292 = vmatpush1.bf16.msra.mxu0 %v3623_v3  ;;  %v3689_v3 = vld [vmem:[#allocation2 + $0x340] ss:$8 sps:$4 sm:$0xff]  }
  0xcc   : > { %1293 = vmatprep.subr.bf16.mxu0 %v3628_v4  ;;  %v3694_v4 = vld [vmem:[#allocation2 + $0x354] ss:$8 sps:$4 sm:$0xff]  }
  0xcf   : > { %1294 = vmatpush1.bf16.msra.mxu0 %v3626_v5  ;;  %v3692_v5 = vld [vmem:[#allocation2 + $0x350] ss:$8 sps:$4 sm:$0xff]  }
  0xd0   : > { %1304 = vmatprep.subr.bf16.mxu0 %v3631_v7  ;;  %v3695_v7 = vld [vmem:[#allocation2 + $0x360] ss:$8 sps:$4 sm:$0xff]  }
  0xd2   : > { %1296 = vmatmul.mubr.bf16.vlgmr.msra.gmra.mrb[0].mxu0 %v565_v9  ;;  %v3698_v9 = vld [vmem:[#allocation2 + $0x370] ss:$8 sps:$4 sm:$0xff]  }
  0xd3   : > { %1305 = vmatpush1.bf16.msra.mxu0 %v3629_v10  ;;  %1336 = vmatprep.mubr.bf16.mxu0 %v568_v11  ;;  %v3703_v10 = vld [vmem:[#allocation2 + $0x384] ss:$8 sps:$4 sm:$0xff]   ;;  %v3701_v11 = vld [vmem:[#allocation2 + $0x380] ss:$8 sps:$4 sm:$0xff]  }
  0xd4   : > { %1306 = vmatprep.subr.bf16.mxu0 %v3634_v12  ;;  %v3706_v12 = vld [vmem:[#allocation2 + $0x394] ss:$8 sps:$4 sm:$0xff]  }
  0xd7   : > { %1307 = vmatpush1.bf16.msra.mxu0 %v3632_v16  ;;  %v3712_v16 = vld [vmem:[#allocation2 + $0x3b4] ss:$8 sps:$4 sm:$0xff]  }
  0xd8   : > { %1308 = vmatprep.subr.bf16.mxu0 %v3637_v17  ;;  %v3710_v17 = vld [vmem:[#allocation2 + $0x3b0] ss:$8 sps:$4 sm:$0xff]  }
  0xdb   : > { %1309 = vmatpush1.bf16.msra.mxu0 %v3635_v20  ;;  %v3718_v20 = vld [vmem:[#allocation2 + $0x3d4] ss:$8 sps:$4 sm:$0xff]  }
  0xdc   : > { %1310 = vmatprep.subr.bf16.mxu0 %v3640_v21  ;;  %v3716_v21 = vld [vmem:[#allocation2 + $0x3d0] ss:$8 sps:$4 sm:$0xff]  }
  0xdf   : > { %1311 = vmatpush1.bf16.msra.mxu0 %v3638_v24  ;;  %v3724_v24 = vld [vmem:[#allocation2 + $0x3f4] ss:$8 sps:$4 sm:$0xff]  }
  0xe0   : > { %1312 = vmatprep.subr.bf16.mxu0 %v3643_v25  ;;  %v3722_v25 = vld [vmem:[#allocation2 + $0x3f0] ss:$8 sps:$4 sm:$0xff]  }
  0xe3   : > { %1313 = vmatpush1.bf16.msra.mxu0 %v3641_v28  ;;  %v3737_v28 = vld [vmem:[%s4413_s3 + $0x70] sm:$0xff]  }
  0xe4   : > { %1314 = vmatprep.subr.bf16.mxu0 %v3646_v29  ;;  %v3738_v29 = vld [vmem:[%s4413_s3 + $0x30] sm:$0xff]   ;;  %3401 = vmatprep.subr.bf16.mxu1 %v3737_v28  ;;  %v3763_v28 = vld [vmem:[%s4416_s6 + $0x40] ss:$8 sps:$4 sm:$0xff]  }
  0xe5   : > { %3402 = vmatpush3.bf16.msra.mxu1 %v3738_v29  ;;  %v3768_v29 = vld [vmem:[%s4416_s6 + $0x54] ss:$8 sps:$4 sm:$0xff]  }
  0xe6   : > { %3403 = vmatprep.subr.bf16.mxu1 %v3739_v30  ;;  %v3766_v30 = vld [vmem:[%s4416_s6 + $0x50] ss:$8 sps:$4 sm:$0xff]  }
  0xe7   : > { %1315 = vmatpush1.bf16.msra.mxu0 %v3644_v32  ;;  %v3943_v32 = vmov 0.0  }
  0xe8   : > { %1316 = vmatprep.subr.bf16.mxu0 %v3649_v33  ;;  %v572_v33 = vlaneseq }
  0xe9   : > { %3404 = vmatpush3.bf16.msra.mxu1 %v3740_v31  ;;  %v3771_v31 = vld [vmem:[%s4416_s6 + $0x64] ss:$8 sps:$4 sm:$0xff]  }
  0xea   : > { %3423 = vmatprep.subr.bf16.mxu1 %v3943_v32  ;;  %v4189_v34 = vshrl.u32 %v572_v33, 7  ;;  %v3774_v33 = vld [vmem:[%s4416_s6 + $0x74] ss:$8 sps:$4 sm:$0xff]  }
  0xeb   : > { %1317 = vmatpush1.bf16.msra.mxu0 %v3647_v35 }
  0xec   : > { %1318 = vmatprep.subr.bf16.mxu0 %v3652_v36  ;;  %v4192_v35 = vsub.s32 0, %v4189_v34  ;;  %v417_v36 = vld [vmem:[%s4418_s8] ss:$8 sm:$0x3] }
  0xef   : > { %1319 = vmatpush1.bf16.msra.mxu0 %v3650_v37  ;;  %v4198_v37 = vsub.s32 1, %v4189_v34 }
  0xf0   : > { %1320 = vmatprep.subr.bf16.mxu0 %v3655_v38  ;;  %v575_v38 = vrot.slane %v417_v36, %v4192_v35 }
  0xf3   : > { %1321 = vmatpush1.bf16.msra.mxu0 %v3653_v39  ;;  %v579_v39 = vrot.slane %v417_v36, %v4198_v37  ;;  %v3772_v36 = vld [vmem:[%s4416_s6 + $0x70] ss:$8 sps:$4 sm:$0xff]  }
  0xf4   : > { %1322 = vmatprep.subr.bf16.mxu0 %v3658_v40 }
  0xf7   : > { %1323 = vmatpush1.bf16.msra.mxu0 %v3656_v41 }
  0xf8   : > { %1324 = vmatprep.subr.bf16.mxu0 %v3661_v42 }
  0xfb   : > { %1325 = vmatpush1.bf16.msra.mxu0 %v3659_v43 }
  0xfc   : > { %1326 = vmatprep.subr.bf16.mxu0 %v3664_v44 }
  0xff   : > { %1327 = vmatpush1.bf16.msra.mxu0 %v3662_v45 }
 0x100   : > { %1328 = vmatprep.subr.bf16.mxu0 %v3667_v46 }
 0x103   : > { %1329 = vmatpush1.bf16.msra.mxu0 %v3665_v47 }
 0x104   : > { %1330 = vmatprep.subr.bf16.mxu0 %v3670_v48 }
 0x107   : > { %1331 = vmatpush1.bf16.msra.mxu0 %v3668_v49  ;;  %v3741_v49 = vld [vmem:[%s4414_s4] sm:$0xff]  }
 0x108   : > { %1332 = vmatprep.subr.bf16.mxu0 %v3673_v50 }
 0x10b   : > { %1333 = vmatpush1.bf16.msra.mxu0 %v3671_v51  ;;  %v3742_v51 = vld [vmem:[%s4414_s4 + $0x8] sm:$0xff]  }
 0x10c   : > { %1334 = vmatprep.subr.bf16.mxu0 %v3676_v52  ;;  %v3743_v52 = vld [vmem:[%s4414_s4 + $0x10] sm:$0xff]  }
 0x10f   : > { %1335 = vmatpush1.bf16.msra.mxu0 %v3674_v53  ;;  %v3744_v53 = vld [vmem:[%s4414_s4 + $0x18] sm:$0xff]  }
 0x110   : > { %1345 = vmatprep.subr.bf16.mxu0 %v3679_v55  ;;  %v3746_v55 = vld [vmem:[%s4414_s4 + $0x28] sm:$0xff]  }
 0x112   : > { %1337 = vmatmul.mubr.bf16.vlgmr.msra.gmra.mrb[0].mxu0 %v567_v57  ;;  %v3748_v57 = vld [vmem:[%s4414_s4 + $0x38] sm:$0xff]  }
 0x113   : > { %1346 = vmatpush1.bf16.msra.mxu0 %v3677_v58  ;;  %1377 = vmatprep.mubr.bf16.mxu0 %v570_v59  ;;  %v418_v59 = vld [vmem:[%s4418_s8 + $0x1] ss:$0 sm:$0xff] }
 0x114   : > { %1347 = vmatprep.subr.bf16.mxu0 %v3682_v60 }
 0x117   : > { %1348 = vmatpush1.bf16.msra.mxu0 %v3680_v61 }
 0x118   : > { %1349 = vmatprep.subr.bf16.mxu0 %v3685_v62 }
 0x11b   : > { %1350 = vmatpush1.bf16.msra.mxu0 %v3683_v63 }
 0x11c   : > { %1351 = vmatprep.subr.bf16.mxu0 %v3688_v0 }
 0x11f   : > { %1352 = vmatpush1.bf16.msra.mxu0 %v3686_v1 }
 0x120   : > { %1353 = vmatprep.subr.bf16.mxu0 %v3691_v2 }
 0x123   : > { %1354 = vmatpush1.bf16.msra.mxu0 %v3689_v3  ;;  %v3749_v3 = vld [vmem:[%s4415_s5] sm:$0xff]  }
 0x124   : > { %1355 = vmatprep.subr.bf16.mxu0 %v3694_v4  ;;  %v419_v4 = vld [vmem:[%s4418_s8 + $0x2] ss:$0 sm:$0xff] }
 0x127   : > { %1356 = vmatpush1.bf16.msra.mxu0 %v3692_v5 }
 0x128   : > { %1357 = vmatprep.subr.bf16.mxu0 %v3697_v6 }
 0x12b   : > { %1358 = vmatpush1.bf16.msra.mxu0 %v3695_v7 }
 0x12c   : > { %1359 = vmatprep.subr.bf16.mxu0 %v3700_v8 }
 0x12f   : > { %1360 = vmatpush1.bf16.msra.mxu0 %v3698_v9 }
 0x130   : > { %1361 = vmatprep.subr.bf16.mxu0 %v3703_v10 }
 0x133   : > { %1362 = vmatpush1.bf16.msra.mxu0 %v3701_v11 }
 0x134   : > { %1363 = vmatprep.subr.bf16.mxu0 %v3706_v12  ;;  %v3750_v12 = vld [vmem:[%s4415_s5 + $0x8] sm:$0xff]  }
 0x137   : > { %1364 = vmatpush1.bf16.msra.mxu0 %v3704_v13  ;;  %v3753_v13 = vld [vmem:[%s4416_s6 + $0x4] ss:$8 sps:$4 sm:$0xff]  }
 0x138   : > { %1365 = vmatprep.subr.bf16.mxu0 %v3709_v14 }
 0x13b   : > { %1366 = vmatpush1.bf16.msra.mxu0 %v3707_v15  ;;  %v1667_v15 = vld [vmem:[%s411_s30] sm:$0xff] }
 0x13c   : > { %1367 = vmatprep.subr.bf16.mxu0 %v3712_v16 }
 0x13f   : > { %1368 = vmatpush1.bf16.msra.mxu0 %v3710_v17 }
 0x140   : > { %1369 = vmatprep.subr.bf16.mxu0 %v3715_v18 }
 0x143   : > { %1370 = vmatpush1.bf16.msra.mxu0 %v3713_v19  ;;  %v3751_v19 = vld [vmem:[%s4416_s6] ss:$8 sps:$4 sm:$0xff]  }
 0x144   : > { %1371 = vmatprep.subr.bf16.mxu0 %v3718_v20 }
 0x147   : > { %1372 = vmatpush1.bf16.msra.mxu0 %v3716_v21  ;;  %v3756_v21 = vld [vmem:[%s4416_s6 + $0x14] ss:$8 sps:$4 sm:$0xff]  }
 0x148   : > { %1373 = vmatprep.subr.bf16.mxu0 %v3721_v22  ;;  %v3754_v22 = vld [vmem:[%s4416_s6 + $0x10] ss:$8 sps:$4 sm:$0xff]  }
 0x14b   : > { %1374 = vmatpush1.bf16.msra.mxu0 %v3719_v23  ;;  %v3759_v23 = vld [vmem:[%s4416_s6 + $0x24] ss:$8 sps:$4 sm:$0xff]  }
 0x14c   : > { %1375 = vmatprep.subr.bf16.mxu0 %v3724_v24  ;;  %v3757_v24 = vld [vmem:[%s4416_s6 + $0x20] ss:$8 sps:$4 sm:$0xff]  }
 0x14f   : > { %1376 = vmatpush1.bf16.msra.mxu0 %v3722_v25  ;;  %v3762_v25 = vld [vmem:[%s4416_s6 + $0x34] ss:$8 sps:$4 sm:$0xff]  }
 0x152   : > { %1378 = vmatmul.mubr.bf16.vlgmr.msra.gmra.mrb[0].mxu0 %v569_v27  ;;  %v3765_v27 = vld [vmem:[%s4416_s6 + $0x44] ss:$8 sps:$4 sm:$0xff]  }
 0x225   : > { %v1379_v40 = vpop.f32.mrb[0].mxu0 }
 0x226   : > { %v3451_v41 = vadd.f32 %v1379_v40, %v575_v38  ;;  %v1381_v42 = vpop.f32.mrb[1].mxu0  ;;  %v3946_v38 = vmov 0   ;;  %v4295_v40 = vld [vmem:[#allocation5 + $0x20] sm:$0xff] }
 0x227   : > { %v3452_v43 = vadd.f32 %v1381_v42, %v579_v39  ;;  %v1383_v44 = vpop.f32.mrb[2].mxu0  ;;  %v4293_v39 = vld [vmem:[#allocation5] sm:$0xff] }
 0x228   : > { %v1386_v45 = vmax.f32 %v3451_v41, 0.0  ;;  %v1384_v46 = vpop.f32.mrb[3].mxu0  ;;  %v3246_v41 = vcombine.low %v4293_v39, %v4295_v40  ;;  %v3247_v42 = vcombine.high %v4293_v39, %v4295_v40  ;;  %v1894_v44 = vld [vmem:[#allocation5 + $0x38] sm:$0xff] }
 0x229   : > { %v1387_v47 = vmax.f32 %v3452_v43, 0.0  ;;  %v1890_v43 = vld [vmem:[#allocation5 + $0x18] sm:$0xff] }
 0x22a   : > { %v1420_v50 = vpack.c.bf16 %v1386_v45, %v1386_v45  ;;  %v3252_v45 = vcombine.low %v1890_v43, %v1894_v44  ;;  %v3253_v46 = vcombine.high %v1890_v43, %v1894_v44 }
 0x22b   : > { %v1421_v48 = vpack.c.bf16 %v1387_v47, %v1387_v47  ;;  %v1898_v47 = vld [vmem:[#allocation5 + $0x58] sm:$0xff] }
 0x22c   : > { %2821 = vmatprep.subr.bf16.mxu0 %v3253_v46  ;;  %v1895_v46 = vld [vmem:[#allocation5 + $0x40] sm:$0xff] }
 0x22d   : > { %1550 = vmatprep.mubr.bf16.mxu1 %v1421_v48  ;;  %2822 = vmatpush1.bf16.msra.mxu0 %v3252_v45  ;;  %v1902_v48 = vld [vmem:[#allocation5 + $0x78] sm:$0xff] }
 0x22e   : > { %1551 = vmatmul.mubr.bf16.vlgmr.msra.gmra.mrb[0].mxu1 %v1420_v50  ;;  %v3261_v50 = vcombine.high %v1898_v47, %v1902_v48 }
 0x22f   : > { %3424 = vmatpush3.bf16.msra.mxu1 %v3741_v49  ;;  %3439 = vmatprep.mubr.msk.bf16.mxu1 %vm3944_vm0, %v3943_v32  ;;  %v3260_v49 = vcombine.low %v1898_v47, %v1902_v48  ;;  %v1899_v47 = vld [vmem:[#allocation5 + $0x60] sm:$0xff] }
 0x230   : > { %3425 = vmatprep.subr.bf16.mxu1 %v3943_v32  ;;  %2823 = vmatprep.subr.bf16.mxu0 %v3261_v50 }
 0x231   : > { %2824 = vmatpush1.bf16.msra.mxu0 %v3260_v49 }
 0x233   : > { %3426 = vmatpush3.bf16.msra.mxu1 %v3742_v51  ;;  %v1906_v51 = vld [vmem:[#allocation5 + $0x98] sm:$0xff] }
 0x234   : > { %3427 = vmatprep.subr.bf16.mxu1 %v3943_v32 }
 0x237   : > { %3428 = vmatpush3.bf16.msra.mxu1 %v3743_v52  ;;  %v1910_v52 = vld [vmem:[#allocation5 + $0xb8] sm:$0xff] }
 0x238   : > { %3429 = vmatprep.subr.bf16.mxu1 %v3943_v32 }
 0x23b   : > { %3430 = vmatpush3.bf16.msra.mxu1 %v3744_v53  ;;  %v3268_v53 = vcombine.low %v1906_v51, %v1910_v52 }
 0x23c   : > { %3431 = vmatprep.subr.bf16.mxu1 %v3943_v32 }
 0x23f   : > { %3432 = vmatpush3.bf16.msra.mxu1 %v3745_v54  ;;  %v3269_v54 = vcombine.high %v1906_v51, %v1910_v52  ;;  %v3255_v51 = vcombine.high %v1895_v46, %v1899_v47  ;;  %v1903_v52 = vld [vmem:[#allocation5 + $0x80] sm:$0xff] }
 0x240   : > { %3433 = vmatprep.subr.bf16.mxu1 %v3943_v32 }
 0x241   : > { %2825 = vmatprep.subr.bf16.mxu0 %v3269_v54  ;;  %v3254_v54 = vcombine.low %v1895_v46, %v1899_v47 }
 0x242   : > { %2826 = vmatpush1.bf16.msra.mxu0 %v3268_v53  ;;  %v1907_v53 = vld [vmem:[#allocation5 + $0xa0] sm:$0xff] }
 0x243   : > { %3434 = vmatpush3.bf16.msra.mxu1 %v3746_v55  ;;  %v1914_v55 = vld [vmem:[#allocation5 + $0xd8] sm:$0xff] }
 0x244   : > { %3435 = vmatprep.subr.bf16.mxu1 %v3943_v32 }
 0x247   : > { %3436 = vmatpush3.bf16.msra.mxu1 %v3747_v56  ;;  %v1918_v56 = vld [vmem:[#allocation5 + $0xf8] sm:$0xff] }
 0x248   : > { %3437 = vmatprep.subr.bf16.mxu1 %v3943_v32 }
 0x24b   : > { %3438 = vmatpush3.bf16.msra.mxu1 %v3748_v57  ;;  %v3276_v57 = vcombine.low %v1914_v55, %v1918_v56 }
 0x24c   : > { %3443 = vmatprep.subr.bf16.mxu1 %v3943_v32 }
 0x301   : > { %v3405_v58 = vpop.f32.mrb[0].mxu1 }
 0x302   : > { %v3406_v60 = vpop.f32.mrb[1].mxu1 }
 0x303   : > { %v3407_v61 = vadd.f32 %v3406_v60, %v3405_v58  ;;  %v3408_v62 = vpop.f32.mrb[2].mxu1  ;;  %v3277_v58 = vcombine.high %v1914_v55, %v1918_v56  ;;  %v1926_v60 = vld [vmem:[#allocation5 + $0x138] sm:$0xff]  ;;  %v3263_v55 = vcombine.high %v1903_v52, %v1907_v53  ;;  %v1911_v56 = vld [vmem:[#allocation5 + $0xc0] sm:$0xff] }
 0x304   : > { %v3409_v63 = vpop.f32.mrb[3].mxu1 }
 0x305   : > { %v1553_v0 = vadd.f32 %v3407_v61, %v418_v59  ;;  %2827 = vmatprep.subr.bf16.mxu0 %v3277_v58  ;;  %v1922_v59 = vld [vmem:[#allocation5 + $0x118] sm:$0xff]  ;;  %v3262_v58 = vcombine.low %v1903_v52, %v1907_v53 }
 0x306   : > { %2828 = vmatpush1.bf16.msra.mxu0 %v3276_v57  ;;  %v3284_v61 = vcombine.low %v1922_v59, %v1926_v60  ;;  %v3285_v62 = vcombine.high %v1922_v59, %v1926_v60  ;;  %v1930_v63 = vld [vmem:[#allocation5 + $0x158] sm:$0xff]  ;;  %v1915_v57 = vld [vmem:[#allocation5 + $0xe0] sm:$0xff] }
 0x307   : > { %v1558_v1 = vmax.f32 %v1553_v0, 0.0  ;;  %v1934_v0 = vld [vmem:[#allocation5 + $0x178] sm:$0xff]  ;;  %v3271_v59 = vcombine.high %v1911_v56, %v1915_v57  ;;  %v1919_v60 = vld [vmem:[#allocation5 + $0x100] sm:$0xff] }
 0x308   : > { %2829 = vmatprep.subr.bf16.mxu0 %v3285_v62  ;;  %v3270_v62 = vcombine.low %v1911_v56, %v1915_v57  ;;  %v2014_v52 = vld [vmem:[#allocation5 + $0x3f8] sm:$0xff]  ;;  %v1888_v56 = vld [vmem:[#allocation5 + $0x8] sm:$0xff] }
 0x309   : > { %v1575_v2 = vpack.c.bf16 %v1558_v1, %v1558_v1  ;;  %v3292_v1 = vcombine.low %v1930_v63, %v1934_v0  ;;  %v1892_v57 = vld [vmem:[#allocation5 + $0x28] sm:$0xff] }
 0x30a   : > { %2830 = vmatpush1.bf16.msra.mxu0 %v3284_v61  ;;  %v1923_v61 = vld [vmem:[#allocation5 + $0x120] sm:$0xff] }
 0x30b   : > { %3440 = vmatmul.mubr.bf16.vlgmr.msra.gmra.mrb[4].mxu1 %v1575_v2  ;;  %v3293_v2 = vcombine.high %v1930_v63, %v1934_v0  ;;  %v3279_v63 = vcombine.high %v1919_v60, %v1923_v61  ;;  %v1927_v0 = vld [vmem:[#allocation5 + $0x140] sm:$0xff]  ;;  %v3278_v39 = vcombine.low %v1919_v60, %v1923_v61 }
 0x30c   : > { %3447 = vmatprep.mubr.msk.bf16.mxu1 %vm3944_vm0, %v3943_v32  ;;  %3444 = vmatpush3.bf16.msra.mxu1 %v3749_v3  ;;  %v1938_v3 = vld [vmem:[#allocation5 + $0x198] sm:$0xff]  ;;  %v3072_v60 = vld [vmem:[%s4418_s8 + $0x4] ss:$8 sm:$0x3] }
 0x30d   : > { %3445 = vmatprep.subr.bf16.mxu1 %v3943_v32  ;;  %v3769_v32 = vld [vmem:[%s4416_s6 + $0x60] ss:$8 sps:$4 sm:$0xff]   ;;  %2831 = vmatprep.subr.bf16.mxu0 %v3293_v2  ;;  %v1757_v61 = vrot.slane %v3072_v60, %v4192_v35 }
 0x30e   : > { %2832 = vmatpush1.bf16.msra.mxu0 %v3292_v1  ;;  %v1931_v1 = vld [vmem:[#allocation5 + $0x160] sm:$0xff] }
 0x30f   : > { %v3287_v40 = vcombine.high %v1927_v0, %v1931_v1  ;;  %v1939_v2 = vld [vmem:[#allocation5 + $0x1a0] sm:$0xff] }
 0x310   : > { %3446 = vmatpush3.bf16.msra.mxu1 %v3750_v12  ;;  %v1958_v12 = vld [vmem:[#allocation5 + $0x238] sm:$0xff] }
 0x311   : > { %1844 = vmatprep.subr.bf16.mxu1 %v3753_v13 }
 0x3de   : > { %v1658_v5 = vpop.f32.mrb[4].mxu1 }
 0x3df   : > { %v1659_v6 = vadd.f32 %v1658_v5, %v419_v4  ;;  %v3441_v7 = vpop.f32.mrb[5].mxu1  ;;  %v1942_v4 = vld [vmem:[#allocation5 + $0x1b8] sm:$0xff] }
 0x3e0   : > { %v1661_v8 = vpop.f32.mrb[6].mxu1  ;;  %v3300_v5 = vcombine.low %v1938_v3, %v1942_v4  ;;  %v1946_v7 = vld [vmem:[#allocation5 + $0x1d8] sm:$0xff] }
 0x3e1   : > { %v1664_v9 = vmul.f32 0.5, %v1659_v6  ;;  %v3442_v10 = vpop.f32.mrb[7].mxu1  ;;  %2919 = vst [vmem:[%s415_s22] sm:$0xff] %v1659_v6  ;;  %v1950_v8 = vld [vmem:[#allocation5 + $0x1f8] sm:$0xff] }
 0x3e2   : > { %v3309_v10 = vcombine.high %v1946_v7, %v1950_v8 }
 0x3e3   : > { %v1665_v11 = vmul.f32 1.442695, %v1664_v9  ;;  %v3308_v9 = vcombine.low %v1946_v7, %v1950_v8 }
 0x3e5   : > { %3775 = vpow2.f32 %v1665_v11  ;;  %v1954_v11 = vld [vmem:[#allocation5 + $0x218] sm:$0xff] }
 0x3e6   : > { %v3316_v13 = vcombine.low %v1954_v11, %v1958_v12 }
 0x3ef   : > { %v3776_v14 = vpop.eup %3775 }
 0x3f0   : > { %1669 = vrot.lane.b32.xlu0 %v3776_v14, %s3945_s24  ;;  %v3317_v14 = vcombine.high %v1954_v11, %v1958_v12  ;;  %s3388_s24 = sshll.u32 %s4024_s17, 10  ;;  %s3947_s17 = smov [#allocation7]  }
 0x3f1   : > { %s4364_s12 = scalar_lea.hbm %s4419_s9, %s3388_s24  ;;  %s3869_s26 = sshll.u32 %s3947_s17, 4  ;;  %s3870_s26 = int_to_ptr.vmem [resolvable:$false] %s3869_s26 }
 0x3f2   : > { %s3871_s29 = scalar_lea.vmem %s3870_s26, 2048  ;;  %p3872_p4 = scmp.lt.s32.totalorder %s4366_s11, %s3870_s26 }
 0x3f3   : > { %p3873_p7 = scmp.lt.s32.totalorder %s3871_s29, %s3865_s21 }
 0x3f5   : > { %p3874_p8 = por %p3873_p7, %p3872_p4 }
 0x3f7   : > { %p3875_p11 = pnand %p3874_p8, %p3868_p3 }
 0x462   : > { %v1670_v16 = vpop.permute.xlu0 %1669 }
 0x463   : > { %v1672_v17 = vmul.f32 %v1670_v16, %v1667_v15  ;;  %v1962_v15 = vld [vmem:[#allocation5 + $0x258] sm:$0xff] }
 0x464   : > { %v1966_v16 = vld [vmem:[#allocation5 + $0x278] sm:$0xff] }
 0x465   : > { %v1673_v18 = vadd.f32 %v1672_v17, %v1659_v6  ;;  %v3301_v6 = vcombine.high %v1938_v3, %v1942_v4  ;;  %v3324_v17 = vcombine.low %v1962_v15, %v1966_v16  ;;  %v3286_v3 = vcombine.low %v1927_v0, %v1931_v1 }
 0x467   : > { %v1678_v20 = vpack.c.bf16 %v1673_v18, %v1673_v18  ;;  %2833 = vmatprep.subr.bf16.mxu0 %v3301_v6  ;;  %v3325_v18 = vcombine.high %v1962_v15, %v1966_v16  ;;  %v1947_v6 = vld [vmem:[#allocation5 + $0x1e0] sm:$0xff] }
 0x468   : > { %2834 = vmatpush1.bf16.msra.mxu0 %v3300_v5  ;;  %v1943_v5 = vld [vmem:[#allocation5 + $0x1c0] sm:$0xff] }
 0x469   : > { %3448 = vmatmul.mubr.msk.bf16.vlgmr.msra.gmra.mrb[8].mxu1 %vm1691_vm1, %v1678_v20  ;;  %2835 = vmatprep.subr.bf16.mxu0 %v3309_v10  ;;  %v1974_v20 = vld [vmem:[#allocation5 + $0x2b8] sm:$0xff]  ;;  %v3303_v8 = vcombine.high %v1943_v5, %v1947_v6  ;;  %v1955_v10 = vld [vmem:[#allocation5 + $0x220] sm:$0xff]  ;;  %v3302_v11 = vcombine.low %v1943_v5, %v1947_v6  ;;  %v1900_v5 = vld [vmem:[#allocation5 + $0x68] sm:$0xff] }
 0x46a   : > { %1845 = vmatpush1.bf16.msra.mxu1 %v3751_v19  ;;  %1876 = vmatprep.mubr.bf16.mxu1 %v3946_v38  ;;  %v1970_v19 = vld [vmem:[#allocation5 + $0x298] sm:$0xff]  ;;  %v420_v38 = vld [vmem:[%s4418_s8 + $0x3] ss:$0 sm:$0xff] }
 0x46b   : > { %1846 = vmatprep.subr.bf16.mxu1 %v3756_v21  ;;  %v3332_v21 = vcombine.low %v1970_v19, %v1974_v20 }
 0x46c   : > { %2836 = vmatpush1.bf16.msra.mxu0 %v3308_v9  ;;  %v1951_v9 = vld [vmem:[#allocation5 + $0x200] sm:$0xff] }
 0x46d   : > { %2837 = vmatprep.subr.bf16.mxu0 %v3317_v14  ;;  %v3311_v12 = vcombine.high %v1951_v9, %v1955_v10  ;;  %v1963_v14 = vld [vmem:[#allocation5 + $0x260] sm:$0xff]  ;;  %v3310_v15 = vcombine.low %v1951_v9, %v1955_v10  ;;  %v1904_v9 = vld [vmem:[#allocation5 + $0x88] sm:$0xff] }
 0x46e   : > { %1847 = vmatpush1.bf16.msra.mxu1 %v3754_v22  ;;  %v3333_v22 = vcombine.high %v1970_v19, %v1974_v20  ;;  %v1908_v10 = vld [vmem:[#allocation5 + $0xa8] sm:$0xff] }
 0x46f   : > { %1848 = vmatprep.subr.bf16.mxu1 %v3759_v23  ;;  %v1978_v23 = vld [vmem:[#allocation5 + $0x2d8] sm:$0xff] }
 0x470   : > { %2838 = vmatpush1.bf16.msra.mxu0 %v3316_v13  ;;  %v1959_v13 = vld [vmem:[#allocation5 + $0x240] sm:$0xff] }
 0x471   : > { %2839 = vmatprep.subr.bf16.mxu0 %v3325_v18  ;;  %v3319_v16 = vcombine.high %v1959_v13, %v1963_v14  ;;  %v1971_v18 = vld [vmem:[#allocation5 + $0x2a0] sm:$0xff]  ;;  %v3318_v19 = vcombine.low %v1959_v13, %v1963_v14  ;;  %v1912_v13 = vld [vmem:[#allocation5 + $0xc8] sm:$0xff] }
 0x472   : > { %1849 = vmatpush1.bf16.msra.mxu1 %v3757_v24  ;;  %v1982_v24 = vld [vmem:[#allocation5 + $0x2f8] sm:$0xff]  ;;  %v1916_v14 = vld [vmem:[#allocation5 + $0xe8] sm:$0xff] }
 0x473   : > { %1850 = vmatprep.subr.bf16.mxu1 %v3762_v25  ;;  %v3340_v25 = vcombine.low %v1978_v23, %v1982_v24 }
 0x474   : > { %2840 = vmatpush1.bf16.msra.mxu0 %v3324_v17  ;;  %v1967_v17 = vld [vmem:[#allocation5 + $0x280] sm:$0xff] }
 0x475   : > { %2841 = vmatprep.subr.bf16.mxu0 %v3333_v22  ;;  %v3327_v20 = vcombine.high %v1967_v17, %v1971_v18  ;;  %v1979_v22 = vld [vmem:[#allocation5 + $0x2e0] sm:$0xff] }
 0x476   : > { %1851 = vmatpush1.bf16.msra.mxu1 %v3760_v26  ;;  %v3341_v26 = vcombine.high %v1978_v23, %v1982_v24  ;;  %v3326_v23 = vcombine.low %v1967_v17, %v1971_v18  ;;  %v1920_v17 = vld [vmem:[#allocation5 + $0x108] sm:$0xff] }
 0x477   : > { %1852 = vmatprep.subr.bf16.mxu1 %v3765_v27  ;;  %v1986_v27 = vld [vmem:[#allocation5 + $0x318] sm:$0xff]  ;;  %v1924_v18 = vld [vmem:[#allocation5 + $0x128] sm:$0xff] }
 0x478   : > { %2842 = vmatpush1.bf16.msra.mxu0 %v3332_v21  ;;  %v1975_v21 = vld [vmem:[#allocation5 + $0x2c0] sm:$0xff] }
 0x479   : > { %2843 = vmatprep.subr.bf16.mxu0 %v3341_v26  ;;  %v3335_v24 = vcombine.high %v1975_v21, %v1979_v22  ;;  %v1987_v26 = vld [vmem:[#allocation5 + $0x320] sm:$0xff] }
 0x47a   : > { %1853 = vmatpush1.bf16.msra.mxu1 %v3763_v28  ;;  %v1990_v28 = vld [vmem:[#allocation5 + $0x338] sm:$0xff] }
 0x47b   : > { %1854 = vmatprep.subr.bf16.mxu1 %v3768_v29  ;;  %v3348_v29 = vcombine.low %v1986_v27, %v1990_v28 }
 0x47c   : > { %2844 = vmatpush1.bf16.msra.mxu0 %v3340_v25  ;;  %v1983_v25 = vld [vmem:[#allocation5 + $0x300] sm:$0xff] }
 0x47e   : > { %1855 = vmatpush1.bf16.msra.mxu1 %v3766_v30  ;;  %v3349_v30 = vcombine.high %v1986_v27, %v1990_v28  ;;  %v3334_v27 = vcombine.low %v1975_v21, %v1979_v22  ;;  %v3343_v28 = vcombine.high %v1983_v25, %v1987_v26  ;;  %v1928_v21 = vld [vmem:[#allocation5 + $0x148] sm:$0xff] }
 0x47f   : > { %1856 = vmatprep.subr.bf16.mxu1 %v3771_v31  ;;  %v1994_v31 = vld [vmem:[#allocation5 + $0x358] sm:$0xff]  ;;  %v1932_v22 = vld [vmem:[#allocation5 + $0x168] sm:$0xff] }
 0x480   : > { %2845 = vmatprep.subr.bf16.mxu0 %v3349_v30  ;;  %v1995_v30 = vld [vmem:[#allocation5 + $0x360] sm:$0xff] }
 0x481   : > { %2846 = vmatpush1.bf16.msra.mxu0 %v3348_v29  ;;  %v1991_v29 = vld [vmem:[#allocation5 + $0x340] sm:$0xff] }
 0x482   : > { %1857 = vmatpush1.bf16.msra.mxu1 %v3769_v32  ;;  %v1998_v32 = vld [vmem:[#allocation5 + $0x378] sm:$0xff] }
 0x483   : > { %1858 = vmatprep.subr.bf16.mxu1 %v3774_v33  ;;  %v3356_v33 = vcombine.low %v1994_v31, %v1998_v32 }
 0x486   : > { %1859 = vmatpush1.bf16.msra.mxu1 %v3772_v36  ;;  %v3357_v36 = vcombine.high %v1994_v31, %v1998_v32  ;;  %v3342_v31 = vcombine.low %v1983_v25, %v1987_v26  ;;  %v3351_v32 = vcombine.high %v1991_v29, %v1995_v30  ;;  %v1936_v25 = vld [vmem:[#allocation5 + $0x188] sm:$0xff] }
 0x487   : > { %2698 = vmatprep.subr.bf16.mxu1 %v3247_v42  ;;  %v1940_v26 = vld [vmem:[#allocation5 + $0x1a8] sm:$0xff] }
 0x488   : > { %2847 = vmatprep.subr.bf16.mxu0 %v3357_v36  ;;  %v1999_v36 = vld [vmem:[#allocation5 + $0x380] sm:$0xff] }
 0x489   : > { %2848 = vmatpush1.bf16.msra.mxu0 %v3356_v33  ;;  %v3350_v33 = vcombine.low %v1991_v29, %v1995_v30  ;;  %v1944_v29 = vld [vmem:[#allocation5 + $0x1c8] sm:$0xff] }
 0x48a   : > { %v1948_v30 = vld [vmem:[#allocation5 + $0x1e8] sm:$0xff] }
 0x53c   : > { %v1729_v42 = vpop.f32.mrb[8].mxu1 }
 0x53d   : > { %v1730_v43 = vadd.f32 %v1729_v42, %v420_v38  ;;  %v3449_v44 = vpop.f32.mrb[9].mxu1  ;;  %v2003_v38 = vld [vmem:[#allocation5 + $0x3a0] sm:$0xff] }
 0x53e   : > { %v1732_v45 = vpop.f32.mrb[10].mxu1  ;;  %v3359_v42 = vcombine.high %v1999_v36, %v2003_v38  ;;  %v2006_v44 = vld [vmem:[#allocation5 + $0x3b8] sm:$0xff] }
 0x53f   : > { %v1735_v48 = vmax.f32 %v1730_v43, 0.0  ;;  %v3450_v49 = vpop.f32.mrb[11].mxu1  ;;  %v2002_v43 = vld [vmem:[#allocation5 + $0x398] sm:$0xff]  ;;  %v3358_v45 = vcombine.low %v1999_v36, %v2003_v38  ;;  %v1956_v36 = vld [vmem:[#allocation5 + $0x228] sm:$0xff]  ;;  %v3304_v38 = vcombine.low %v1944_v29, %v1948_v30 }
 0x540   : > { %v3365_v46 = vcombine.high %v2002_v43, %v2006_v44  ;;  %v3364_v47 = vcombine.low %v2002_v43, %v2006_v44  ;;  %v2011_v49 = vld [vmem:[#allocation5 + $0x3e0] sm:$0xff]  ;;  %v1960_v43 = vld [vmem:[#allocation5 + $0x248] sm:$0xff] }
 0x541   : > { %v1752_v50 = vpack.c.bf16 %v1735_v48, %v1735_v48  ;;  %v2007_v48 = vld [vmem:[#allocation5 + $0x3c0] sm:$0xff]  ;;  %v1964_v44 = vld [vmem:[#allocation5 + $0x268] sm:$0xff] }
 0x542   : > { %2849 = vmatprep.subr.bf16.mxu0 %v3365_v46  ;;  %v3366_v53 = vcombine.low %v2007_v48, %v2011_v49  ;;  %v3321_v46 = vcombine.high %v1960_v43, %v1964_v44 }
 0x543   : > { %1877 = vmatmul.mubr.bf16.vlgmr.msra.gmra.mrb[12].mxu1 %v1752_v50  ;;  %2850 = vmatpush1.bf16.msra.mxu0 %v3364_v47  ;;  %v3367_v50 = vcombine.high %v2007_v48, %v2011_v49  ;;  %v1968_v47 = vld [vmem:[#allocation5 + $0x288] sm:$0xff]  ;;  %v3320_v49 = vcombine.low %v1960_v43, %v1964_v44  ;;  %v1953_v43 = vld [vmem:[#allocation5 + $0x210] sm:$0xff] }
 0x544   : > { %2699 = vmatpush1.bf16.msra.mxu1 %v3246_v41  ;;  %v1935_v41 = vld [vmem:[#allocation5 + $0x180] sm:$0xff]  ;;  %v1972_v48 = vld [vmem:[#allocation5 + $0x2a8] sm:$0xff]  ;;  %v1957_v44 = vld [vmem:[#allocation5 + $0x230] sm:$0xff] }
 0x545   : > { %2700 = vmatprep.subr.bf16.mxu1 %v3255_v51  ;;  %v3295_v4 = vcombine.high %v1935_v41, %v1939_v2  ;;  %v3294_v7 = vcombine.low %v1935_v41, %v1939_v2  ;;  %v2010_v51 = vld [vmem:[#allocation5 + $0x3d8] sm:$0xff] }
 0x548   : > { %2701 = vmatpush1.bf16.msra.mxu1 %v3254_v54  ;;  %v3373_v54 = vcombine.high %v2010_v51, %v2014_v52 }
 0x549   : > { %2702 = vmatprep.subr.bf16.mxu1 %v3263_v55  ;;  %v3372_v55 = vcombine.low %v2010_v51, %v2014_v52  ;;  %v1976_v51 = vld [vmem:[#allocation5 + $0x2c8] sm:$0xff] }
 0x54a   : > { %2851 = vmatprep.subr.bf16.mxu0 %v3373_v54  ;;  %v1980_v52 = vld [vmem:[#allocation5 + $0x2e8] sm:$0xff] }
 0x54b   : > { %2852 = vmatpush1.bf16.msra.mxu0 %v3372_v55  ;;  %v3337_v54 = vcombine.high %v1976_v51, %v1980_v52  ;;  %v1984_v55 = vld [vmem:[#allocation5 + $0x308] sm:$0xff] }
 0x54c   : > { %2703 = vmatpush1.bf16.msra.mxu1 %v3262_v58  ;;  %v3249_v58 = vcombine.high %v1888_v56, %v1892_v57 }
 0x54d   : > { %2704 = vmatprep.subr.bf16.mxu1 %v3271_v59  ;;  %v3248_v59 = vcombine.low %v1888_v56, %v1892_v57  ;;  %v1988_v56 = vld [vmem:[#allocation5 + $0x328] sm:$0xff]  ;;  %v3336_v57 = vcombine.low %v1976_v51, %v1980_v52  ;;  %v1969_v51 = vld [vmem:[#allocation5 + $0x290] sm:$0xff] }
 0x54e   : > { %v1973_v52 = vld [vmem:[#allocation5 + $0x2b0] sm:$0xff] }
 0x550   : > { %2705 = vmatpush1.bf16.msra.mxu1 %v3270_v62  ;;  %v1761_v62 = vrot.slane %v3072_v60, %v4198_v37  ;;  %v1996_v60 = vld [vmem:[#allocation5 + $0x368] sm:$0xff] }
 0x551   : > { %2706 = vmatprep.subr.bf16.mxu1 %v3279_v63 }
 0x554   : > { %2707 = vmatpush1.bf16.msra.mxu1 %v3278_v39 }
 0x555   : > { %2708 = vmatprep.subr.bf16.mxu1 %v3287_v40 }
 0x558   : > { %2709 = vmatpush1.bf16.msra.mxu1 %v3286_v3 }
 0x559   : > { %2710 = vmatprep.subr.bf16.mxu1 %v3295_v4  ;;  %v1896_v4 = vld [vmem:[#allocation5 + $0x48] sm:$0xff] }
 0x55c   : > { %2711 = vmatpush1.bf16.msra.mxu1 %v3294_v7 }
 0x55d   : > { %2712 = vmatprep.subr.bf16.mxu1 %v3303_v8  ;;  %v3257_v8 = vcombine.high %v1896_v4, %v1900_v5 }
 0x560   : > { %2713 = vmatpush1.bf16.msra.mxu1 %v3302_v11  ;;  %v3256_v11 = vcombine.low %v1896_v4, %v1900_v5  ;;  %v1889_v4 = vld [vmem:[#allocation5 + $0x10] sm:$0xff] }
 0x561   : > { %2714 = vmatprep.subr.bf16.mxu1 %v3311_v12  ;;  %v3265_v12 = vcombine.high %v1904_v9, %v1908_v10  ;;  %v1893_v5 = vld [vmem:[#allocation5 + $0x30] sm:$0xff] }
 0x564   : > { %2715 = vmatpush1.bf16.msra.mxu1 %v3310_v15  ;;  %v3264_v15 = vcombine.low %v1904_v9, %v1908_v10  ;;  %v3251_v9 = vcombine.high %v1889_v4, %v1893_v5  ;;  %v1897_v10 = vld [vmem:[#allocation5 + $0x50] sm:$0xff] }
 0x565   : > { %2716 = vmatprep.subr.bf16.mxu1 %v3319_v16  ;;  %v3273_v16 = vcombine.high %v1912_v13, %v1916_v14 }
 0x568   : > { %2717 = vmatpush1.bf16.msra.mxu1 %v3318_v19  ;;  %v3272_v19 = vcombine.low %v1912_v13, %v1916_v14  ;;  %v1905_v14 = vld [vmem:[#allocation5 + $0x90] sm:$0xff] }
 0x569   : > { %2718 = vmatprep.subr.bf16.mxu1 %v3327_v20  ;;  %v3281_v20 = vcombine.high %v1920_v17, %v1924_v18 }
 0x56c   : > { %2719 = vmatpush1.bf16.msra.mxu1 %v3326_v23  ;;  %v3280_v23 = vcombine.low %v1920_v17, %v1924_v18  ;;  %v1913_v18 = vld [vmem:[#allocation5 + $0xd0] sm:$0xff] }
 0x56d   : > { %2720 = vmatprep.subr.bf16.mxu1 %v3335_v24  ;;  %v3289_v24 = vcombine.high %v1928_v21, %v1932_v22 }
 0x570   : > { %2721 = vmatpush1.bf16.msra.mxu1 %v3334_v27  ;;  %v3288_v27 = vcombine.low %v1928_v21, %v1932_v22  ;;  %v1921_v22 = vld [vmem:[#allocation5 + $0x110] sm:$0xff] }
 0x571   : > { %2722 = vmatprep.subr.bf16.mxu1 %v3343_v28  ;;  %v3297_v28 = vcombine.high %v1936_v25, %v1940_v26 }
 0x574   : > { %2723 = vmatpush1.bf16.msra.mxu1 %v3342_v31  ;;  %v3296_v31 = vcombine.low %v1936_v25, %v1940_v26  ;;  %v1929_v26 = vld [vmem:[#allocation5 + $0x150] sm:$0xff] }
 0x575   : > { %2724 = vmatprep.subr.bf16.mxu1 %v3351_v32  ;;  %v3305_v32 = vcombine.high %v1944_v29, %v1948_v30  ;;  %v1937_v29 = vld [vmem:[#allocation5 + $0x190] sm:$0xff] }
 0x576   : > { %v1941_v30 = vld [vmem:[#allocation5 + $0x1b0] sm:$0xff] }
 0x578   : > { %2725 = vmatpush1.bf16.msra.mxu1 %v3350_v33  ;;  %v1952_v33 = vld [vmem:[#allocation5 + $0x208] sm:$0xff] }
 0x579   : > { %2726 = vmatprep.subr.bf16.mxu1 %v3359_v42  ;;  %v3313_v42 = vcombine.high %v1952_v33, %v1956_v36 }
 0x57c   : > { %2727 = vmatpush1.bf16.msra.mxu1 %v3358_v45  ;;  %v3312_v45 = vcombine.low %v1952_v33, %v1956_v36  ;;  %v1945_v33 = vld [vmem:[#allocation5 + $0x1d0] sm:$0xff] }
 0x57d   : > { %2728 = vmatprep.subr.bf16.mxu1 %v3367_v50  ;;  %v3329_v50 = vcombine.high %v1968_v47, %v1972_v48  ;;  %v1949_v36 = vld [vmem:[#allocation5 + $0x1f0] sm:$0xff] }
 0x580   : > { %2729 = vmatpush1.bf16.msra.mxu1 %v3366_v53  ;;  %v3328_v53 = vcombine.low %v1968_v47, %v1972_v48  ;;  %v1961_v47 = vld [vmem:[#allocation5 + $0x250] sm:$0xff] }
 0x581   : > { %2739 = vmatprep.subr.bf16.mxu1 %v3249_v58  ;;  %v3345_v58 = vcombine.high %v1984_v55, %v1988_v56  ;;  %v1965_v48 = vld [vmem:[#allocation5 + $0x270] sm:$0xff] }
 0x616   : > { %v1878_v63 = vpop.f32.mrb[12].mxu1 }
 0x617   : > { %v1879_v0 = vadd.f32 %v1878_v63, %v1757_v61  ;;  %v1880_v1 = vpop.f32.mrb[13].mxu1  ;;  %v3344_v61 = vcombine.low %v1984_v55, %v1988_v56  ;;  %v2000_v63 = vld [vmem:[#allocation5 + $0x388] sm:$0xff]  ;;  %v1977_v55 = vld [vmem:[#allocation5 + $0x2d0] sm:$0xff] }
 0x618   : > { %v1881_v39 = vadd.f32 %v1880_v1, %v1761_v62  ;;  %v1882_v40 = vpop.f32.mrb[14].mxu1  ;;  %v1981_v56 = vld [vmem:[#allocation5 + $0x2f0] sm:$0xff] }
 0x619   : > { %v1885_v41 = vmax.f32 %v1879_v0, 0.0  ;;  %v1883_v2 = vpop.f32.mrb[15].mxu1  ;;  %v2004_v0 = vld [vmem:[#allocation5 + $0x3a8] sm:$0xff] }
 0x61a   : > { %v1886_v3 = vmax.f32 %v1881_v39, 0.0  ;;  %v3361_v39 = vcombine.high %v2000_v63, %v2004_v0  ;;  %v2008_v40 = vld [vmem:[#allocation5 + $0x3c8] sm:$0xff]  ;;  %v3360_v2 = vcombine.low %v2000_v63, %v2004_v0  ;;  %v1993_v63 = vld [vmem:[#allocation5 + $0x350] sm:$0xff] }
 0x61b   : > { %v4314_v7 = vpack.c.bf16 %v1885_v41, %v1885_v41  ;;  %v2012_v41 = vld [vmem:[#allocation5 + $0x3e8] sm:$0xff]  ;;  %v1997_v0 = vld [vmem:[#allocation5 + $0x370] sm:$0xff] }
 0x61c   : > { %v4312_v6 = vpack.c.bf16 %v1886_v3, %v1886_v3  ;;  %v3369_v3 = vcombine.high %v2008_v40, %v2012_v41 }
 0x61e   : > { %2730 = vmatprep.mubr.bf16.mxu1 %v4312_v6  ;;  %2853 = vmatprep.mubr.bf16.mxu0 %v4312_v6 }
 0x61f   : > { %2731 = vmatmul.mubr.bf16.vlgmr.msra.gmra.mrb[16].mxu1 %v4314_v7  ;;  %2854 = vmatmul.mubr.bf16.vlgmr.msra.gmra.mrb[4].mxu0 %v4314_v7 }
 0x620   : > { %2740 = vmatpush1.bf16.msra.mxu1 %v3248_v59  ;;  %2771 = vmatprep.mubr.bf16.mxu1 %v4312_v6  ;;  %v1992_v59 = vld [vmem:[#allocation5 + $0x348] sm:$0xff] }
 0x621   : > { %2741 = vmatprep.subr.bf16.mxu1 %v3257_v8  ;;  %v3353_v62 = vcombine.high %v1992_v59, %v1996_v60  ;;  %v3352_v1 = vcombine.low %v1992_v59, %v1996_v60  ;;  %v3368_v8 = vcombine.low %v2008_v40, %v2012_v41  ;;  %v1985_v59 = vld [vmem:[#allocation5 + $0x310] sm:$0xff] }
 0x622   : > { %v1989_v60 = vld [vmem:[#allocation5 + $0x330] sm:$0xff] }
 0x623   : > { %v2001_v40 = vld [vmem:[#allocation5 + $0x390] sm:$0xff] }
 0x624   : > { %2742 = vmatpush1.bf16.msra.mxu1 %v3256_v11  ;;  %v1901_v11 = vld [vmem:[#allocation5 + $0x70] sm:$0xff] }
 0x625   : > { %2743 = vmatprep.subr.bf16.mxu1 %v3265_v12  ;;  %v3250_v12 = vcombine.low %v1889_v4, %v1893_v5  ;;  %v3259_v13 = vcombine.high %v1897_v10, %v1901_v11  ;;  %v2005_v41 = vld [vmem:[#allocation5 + $0x3b0] sm:$0xff] }
 0x626   : > { %v2009_v4 = vld [vmem:[#allocation5 + $0x3d0] sm:$0xff] }
 0x627   : > { %v2013_v5 = vld [vmem:[#allocation5 + $0x3f0] sm:$0xff] }
 0x628   : > { %2744 = vmatpush1.bf16.msra.mxu1 %v3264_v15  ;;  %v1909_v15 = vld [vmem:[#allocation5 + $0xb0] sm:$0xff] }
 0x629   : > { %2745 = vmatprep.subr.bf16.mxu1 %v3273_v16  ;;  %v3258_v16 = vcombine.low %v1897_v10, %v1901_v11  ;;  %v3267_v17 = vcombine.high %v1905_v14, %v1909_v15  ;;  %v3370_v10 = vcombine.low %v2009_v4, %v2013_v5  ;;  %v3073_v11 = vld [vmem:[%s4418_s8 + $0x5] ss:$8 sm:$0xf] }
 0x62c   : > { %2746 = vmatpush1.bf16.msra.mxu1 %v3272_v19  ;;  %v1917_v19 = vld [vmem:[#allocation5 + $0xf0] sm:$0xff] }
 0x62d   : > { %2747 = vmatprep.subr.bf16.mxu1 %v3281_v20  ;;  %v3266_v20 = vcombine.low %v1905_v14, %v1909_v15  ;;  %v3275_v21 = vcombine.high %v1913_v18, %v1917_v19  ;;  %v2044_v14 = vsub.s32 6, %v4189_v34  ;;  %v2048_v15 = vsub.s32 7, %v4189_v34 }
 0x630   : > { %2748 = vmatpush1.bf16.msra.mxu1 %v3280_v23  ;;  %v1925_v23 = vld [vmem:[#allocation5 + $0x130] sm:$0xff] }
 0x631   : > { %2749 = vmatprep.subr.bf16.mxu1 %v3289_v24  ;;  %v3274_v24 = vcombine.low %v1913_v18, %v1917_v19  ;;  %v3283_v25 = vcombine.high %v1921_v22, %v1925_v23 }
 0x634   : > { %2750 = vmatpush1.bf16.msra.mxu1 %v3288_v27  ;;  %v1933_v27 = vld [vmem:[#allocation5 + $0x170] sm:$0xff] }
 0x635   : > { %2751 = vmatprep.subr.bf16.mxu1 %v3297_v28  ;;  %v3282_v28 = vcombine.low %v1921_v22, %v1925_v23 }
 0x638   : > { %2752 = vmatpush1.bf16.msra.mxu1 %v3296_v31  ;;  %v3290_v31 = vcombine.low %v1929_v26, %v1933_v27 }
 0x639   : > { %2753 = vmatprep.subr.bf16.mxu1 %v3305_v32  ;;  %v3299_v32 = vcombine.high %v1937_v29, %v1941_v30 }
 0x63c   : > { %2754 = vmatpush1.bf16.msra.mxu1 %v3304_v38  ;;  %v3298_v38 = vcombine.low %v1937_v29, %v1941_v30 }
 0x63d   : > { %2755 = vmatprep.subr.bf16.mxu1 %v3313_v42  ;;  %v3307_v42 = vcombine.high %v1945_v33, %v1949_v36 }
 0x640   : > { %2756 = vmatpush1.bf16.msra.mxu1 %v3312_v45  ;;  %v3306_v45 = vcombine.low %v1945_v33, %v1949_v36 }
 0x641   : > { %2757 = vmatprep.subr.bf16.mxu1 %v3321_v46  ;;  %v3315_v46 = vcombine.high %v1953_v43, %v1957_v44 }
 0x644   : > { %2758 = vmatpush1.bf16.msra.mxu1 %v3320_v49  ;;  %v3314_v49 = vcombine.low %v1953_v43, %v1957_v44 }
 0x645   : > { %2759 = vmatprep.subr.bf16.mxu1 %v3329_v50  ;;  %v3323_v50 = vcombine.high %v1961_v47, %v1965_v48 }
 0x648   : > { %2760 = vmatpush1.bf16.msra.mxu1 %v3328_v53  ;;  %v3322_v53 = vcombine.low %v1961_v47, %v1965_v48 }
 0x649   : > { %2761 = vmatprep.subr.bf16.mxu1 %v3337_v54  ;;  %v3331_v54 = vcombine.high %v1969_v51, %v1973_v52 }
 0x64c   : > { %2762 = vmatpush1.bf16.msra.mxu1 %v3336_v57  ;;  %v3330_v57 = vcombine.low %v1969_v51, %v1973_v52  ;;  %v2032_v51 = vsub.s32 3, %v4189_v34 }
 0x64d   : > { %2763 = vmatprep.subr.bf16.mxu1 %v3345_v58  ;;  %v3339_v58 = vcombine.high %v1977_v55, %v1981_v56 }
 0x650   : > { %2764 = vmatpush1.bf16.msra.mxu1 %v3344_v61  ;;  %v3338_v61 = vcombine.low %v1977_v55, %v1981_v56 }
 0x651   : > { %2765 = vmatprep.subr.bf16.mxu1 %v3353_v62  ;;  %v3347_v62 = vcombine.high %v1985_v59, %v1989_v60 }
 0x654   : > { %2766 = vmatpush1.bf16.msra.mxu1 %v3352_v1  ;;  %v3346_v1 = vcombine.low %v1985_v59, %v1989_v60 }
 0x655   : > { %2767 = vmatprep.subr.bf16.mxu1 %v3361_v39  ;;  %v3355_v39 = vcombine.high %v1993_v63, %v1997_v0 }
 0x658   : > { %2768 = vmatpush1.bf16.msra.mxu1 %v3360_v2  ;;  %v3354_v2 = vcombine.low %v1993_v63, %v1997_v0 }
 0x659   : > { %2769 = vmatprep.subr.bf16.mxu1 %v3369_v3  ;;  %v3363_v3 = vcombine.high %v2001_v40, %v2005_v41 }
 0x65c   : > { %2770 = vmatpush1.bf16.msra.mxu1 %v3368_v8  ;;  %v3362_v8 = vcombine.low %v2001_v40, %v2005_v41  ;;  %v2036_v41 = vsub.s32 4, %v4189_v34 }
 0x65d   : > { %2780 = vmatprep.subr.bf16.mxu1 %v3251_v9  ;;  %v3371_v9 = vcombine.high %v2009_v4, %v2013_v5 }
 0x65f   : > { %2772 = vmatmul.mubr.bf16.vlgmr.msra.gmra.mrb[20].mxu1 %v4314_v7 }
 0x660   : > { %2781 = vmatpush1.bf16.msra.mxu1 %v3250_v12  ;;  %2812 = vmatprep.mubr.bf16.mxu1 %v4312_v6  ;;  %v3291_v6 = vcombine.high %v1929_v26, %v1933_v27  ;;  %v3074_v12 = vld [vmem:[%s4418_s8 + $0x5] ss:$8 sm:$0xf0] }
 0x661   : > { %2782 = vmatprep.subr.bf16.mxu1 %v3259_v13  ;;  %v4330_v13 = vor.u32 %v3074_v12, %v3073_v11 }
 0x663   : > { %v2049_v18 = vrot.slane %v4330_v13, %v2048_v15 }
 0x664   : > { %2783 = vmatpush1.bf16.msra.mxu1 %v3258_v16  ;;  %v2021_v16 = vrot.slane %v4330_v13, %v4192_v35 }
 0x665   : > { %2784 = vmatprep.subr.bf16.mxu1 %v3267_v17  ;;  %v2045_v17 = vrot.slane %v4330_v13, %v2044_v14 }
 0x668   : > { %2785 = vmatpush1.bf16.msra.mxu1 %v3266_v20 }
 0x669   : > { %2786 = vmatprep.subr.bf16.mxu1 %v3275_v21 }
 0x66c   : > { %2787 = vmatpush1.bf16.msra.mxu1 %v3274_v24 }
 0x66d   : > { %2788 = vmatprep.subr.bf16.mxu1 %v3283_v25 }
 0x670   : > { %2789 = vmatpush1.bf16.msra.mxu1 %v3282_v28 }
 0x671   : > { %2790 = vmatprep.subr.bf16.mxu1 %v3291_v6 }
 0x674   : > { %2791 = vmatpush1.bf16.msra.mxu1 %v3290_v31 }
 0x675   : > { %2792 = vmatprep.subr.bf16.mxu1 %v3299_v32 }
 0x678   : > { %2793 = vmatpush1.bf16.msra.mxu1 %v3298_v38 }
 0x679   : > { %2794 = vmatprep.subr.bf16.mxu1 %v3307_v42 }
 0x67c   : > { %2795 = vmatpush1.bf16.msra.mxu1 %v3306_v45 }
 0x67d   : > { %2796 = vmatprep.subr.bf16.mxu1 %v3315_v46 }
 0x680   : > { %2797 = vmatpush1.bf16.msra.mxu1 %v3314_v49 }
 0x681   : > { %2798 = vmatprep.subr.bf16.mxu1 %v3323_v50  ;;  %v2028_v50 = vsub.s32 2, %v4189_v34 }
 0x683   : > { %v2029_v52 = vrot.slane %v4330_v13, %v2028_v50 }
 0x684   : > { %2799 = vmatpush1.bf16.msra.mxu1 %v3322_v53  ;;  %v2033_v53 = vrot.slane %v4330_v13, %v2032_v51 }
 0x685   : > { %2800 = vmatprep.subr.bf16.mxu1 %v3331_v54 }
 0x688   : > { %2801 = vmatpush1.bf16.msra.mxu1 %v3330_v57 }
 0x689   : > { %2802 = vmatprep.subr.bf16.mxu1 %v3339_v58 }
 0x68c   : > { %2803 = vmatpush1.bf16.msra.mxu1 %v3338_v61 }
 0x68d   : > { %2804 = vmatprep.subr.bf16.mxu1 %v3347_v62 }
 0x690   : > { %2805 = vmatpush1.bf16.msra.mxu1 %v3346_v1 }
 0x691   : > { %2806 = vmatprep.subr.bf16.mxu1 %v3355_v39 }
 0x694   : > { %2807 = vmatpush1.bf16.msra.mxu1 %v3354_v2  ;;  %v2040_v2 = vsub.s32 5, %v4189_v34 }
 0x695   : > { %2808 = vmatprep.subr.bf16.mxu1 %v3363_v3  ;;  %v2037_v3 = vrot.slane %v4330_v13, %v2036_v41 }
 0x696   : > { %v2041_v4 = vrot.slane %v4330_v13, %v2040_v2 }
 0x698   : > { %2809 = vmatpush1.bf16.msra.mxu1 %v3362_v8 }
 0x699   : > { %2810 = vmatprep.subr.bf16.mxu1 %v3371_v9 }
 0x69c   : > { %2811 = vmatpush1.bf16.msra.mxu1 %v3370_v10 }
 0x69f   : > { %2813 = vmatmul.mubr.bf16.vlgmr.msra.gmra.mrb[24].mxu1 %v4314_v7  ;;  %v2025_v7 = vrot.slane %v4330_v13, %v4198_v37 }
 0x6f2   : > { %v2732_v19 = vpop.f32.mrb[16].mxu1  ;;  %v2855_v20 = vpop.f32.mrb[4].mxu0 }
 0x6f3   : > { %v2733_v21 = vadd.f32 %v2732_v19, %v2021_v16  ;;  %v2856_v22 = vadd.f32 %v2855_v20, %v2045_v17  ;;  %v2734_v23 = vpop.f32.mrb[17].mxu1  ;;  %v2857_v24 = vpop.f32.mrb[5].mxu0 }
 0x6f4   : > { %v2735_v25 = vadd.f32 %v2734_v23, %v2025_v7  ;;  %v2858_v26 = vadd.f32 %v2857_v24, %v2049_v18  ;;  %v2736_v27 = vpop.f32.mrb[18].mxu1  ;;  %v2859_v28 = vpop.f32.mrb[6].mxu0 }
 0x6f5   : > { %v3374_v6 = vmul.f32 -1.442695, %v2733_v21  ;;  %v3380_v29 = vmul.f32 -1.442695, %v2856_v22  ;;  %v2737_v35 = vpop.f32.mrb[19].mxu1  ;;  %v2860_v30 = vpop.f32.mrb[7].mxu0 }
 0x6f6   : > { %v3375_v31 = vmul.f32 -1.442695, %v2735_v25  ;;  %v3381_v32 = vmul.f32 -1.442695, %v2858_v26 }
 0x6f7   : > { %3777 = vpow2.f32 %v3374_v6 }
 0x6f8   : > { %3779 = vpow2.f32 %v3380_v29 }
 0x6f9   : > { %3781 = vpow2.f32 %v3375_v31 }
 0x6fa   : > { %3783 = vpow2.f32 %v3381_v32 }
 0x701   : > { %v3778_v37 = vpop.eup %3777 }
 0x702   : > { %v3780_v33 = vpop.eup %3779  ;;  %v2886_v36 = vadd.f32 1.0, %v3778_v37 }
 0x703   : > { %v3782_v38 = vpop.eup %3781  ;;  %v2892_v42 = vadd.f32 1.0, %v3780_v33 }
 0x704   : > { %v3784_v43 = vpop.eup %3783  ;;  %3785 = vrcp.f32 %v2886_v36  ;;  %v2887_v44 = vadd.f32 1.0, %v3782_v38 }
 0x705   : > { %3787 = vrcp.f32 %v2892_v42  ;;  %v2893_v45 = vadd.f32 1.0, %v3784_v43 }
 0x706   : > { %3789 = vrcp.f32 %v2887_v44 }
 0x707   : > { %3791 = vrcp.f32 %v2893_v45 }
 0x70e   : > { %v3786_v46 = vpop.eup %3785 }
 0x70f   : > { %v3788_v47 = vpop.eup %3787  ;;  %2910 = vst [vmem:[%s4343_s19] sm:$0xff] %v3786_v46 }
 0x710   : > { %v3790_v48 = vpop.eup %3789  ;;  %2916 = vst [vmem:[%s4343_s19 + $0x30] sm:$0xff] %v3788_v47 }
 0x711   : > { %v3792_v49 = vpop.eup %3791  ;;  %2911 = vst [vmem:[%s4343_s19 + $0x8] sm:$0xff] %v3790_v48 }
 0x712   : > { %2918 = vst.msk [vmem:[%s4343_s19 + $0x38] sm:$0xff] %vm2917_vm2, %v3792_v49 }
 0x732   : > { %v2773_v54 = vpop.f32.mrb[20].mxu1 }
 0x733   : > { %v2774_v55 = vadd.f32 %v2773_v54, %v2029_v52  ;;  %v2775_v56 = vpop.f32.mrb[21].mxu1 }
 0x734   : > { %v2776_v57 = vadd.f32 %v2775_v56, %v2033_v53  ;;  %v2777_v58 = vpop.f32.mrb[22].mxu1 }
 0x735   : > { %v3376_v59 = vmul.f32 -1.442695, %v2774_v55  ;;  %v2778_v60 = vpop.f32.mrb[23].mxu1 }
 0x736   : > { %v3377_v61 = vmul.f32 -1.442695, %v2776_v57 }
 0x737   : > { %3793 = vpow2.f32 %v3376_v59 }
 0x738   : > { %3795 = vpow2.f32 %v3377_v61 }
 0x741   : > { %v3794_v62 = vpop.eup %3793 }
 0x742   : > { %v3796_v63 = vpop.eup %3795  ;;  %v2888_v0 = vadd.f32 1.0, %v3794_v62 }
 0x743   : > { %v2889_v1 = vadd.f32 1.0, %v3796_v63 }
 0x744   : > { %3797 = vrcp.f32 %v2888_v0 }
 0x745   : > { %3799 = vrcp.f32 %v2889_v1 }
 0x74e   : > { %v3798_v39 = vpop.eup %3797 }
 0x74f   : > { %v3800_v40 = vpop.eup %3799  ;;  %2912 = vst [vmem:[%s4343_s19 + $0x10] sm:$0xff] %v3798_v39 }
 0x750   : > { %2913 = vst [vmem:[%s4343_s19 + $0x18] sm:$0xff] %v3800_v40 }
 0x772   : > { %v2814_v5 = vpop.f32.mrb[24].mxu1 }
 0x773   : > { %v2815_v8 = vadd.f32 %v2814_v5, %v2037_v3  ;;  %v2816_v9 = vpop.f32.mrb[25].mxu1 }
 0x774   : > { %v2817_v10 = vadd.f32 %v2816_v9, %v2041_v4  ;;  %v2818_v11 = vpop.f32.mrb[26].mxu1 }
 0x775   : > { %v3378_v12 = vmul.f32 -1.442695, %v2815_v8  ;;  %v2819_v14 = vpop.f32.mrb[27].mxu1 }
 0x776   : > { %v3379_v15 = vmul.f32 -1.442695, %v2817_v10 }
 0x777   : > { %3801 = vpow2.f32 %v3378_v12 }
 0x778   : > { %3803 = vpow2.f32 %v3379_v15 }
 0x781   : > { %v3802_v34 = vpop.eup %3801 }
 0x782   : > { %v3804_v16 = vpop.eup %3803  ;;  %v2890_v17 = vadd.f32 1.0, %v3802_v34 }
 0x783   : > { %v2891_v13 = vadd.f32 1.0, %v3804_v16 }
 0x784   : > { %3805 = vrcp.f32 %v2890_v17 }
 0x785   : > { %3807 = vrcp.f32 %v2891_v13 }
 0x78e   : > { %v3806_v7 = vpop.eup %3805 }
 0x78f   : > { %v3808_v18 = vpop.eup %3807  ;;  %2914 = vst [vmem:[%s4343_s19 + $0x20] sm:$0xff] %v3806_v7 }
 0x790   : > { %2915 = vst [vmem:[%s4343_s19 + $0x28] sm:$0xff] %v3808_v18 }
 0x791   : > { %3878 = shalt.err (!%p3875_p11)
}
 0x792   : > { %s3879_s22 = scalar_lea.hbm %s4364_s12, 1024  ;;  %s3883_s15 = scalar_lea.hbm %s4419_s9, 4096 }
 0x793   : > { %p3880_p13 = scmp.ne.s32.totalorder %s4364_s12, %s3879_s22  ;;  %p3884_p6 = scmp.lt.u32.totalorder %s4364_s12, %s4419_s9 }
 0x794   : > { %p3885_p9 = scmp.lt.u32.totalorder %s3883_s15, %s3879_s22  ;;  %p3887_p10 = scmp.lt.u32.totalorder %s3879_s22, %s4364_s12 }
 0x795   : > { %p3881_p0 = pnand %p3880_p13, %p4441_p1 }
 0x796   : > { %p3886_p12 = por %p3885_p9, %p3884_p6 }
 0x797   : > { %p3882_p5 = pneg %p3881_p0 }
 0x798   : > { %p3888_p2 = por %p3887_p10, %p3886_p12 }
 0x79a   : > { %p3889_p3 = pnand %p3888_p2, %p3882_p5 }
 0x79c   : > { %3892 = shalt.err (!%p3889_p3)
}
 0x79d   : > { %3473 = dma.vmem_to_hbm [thread:$0]  (%p4441_p1), %s4366_s11, 1024, %s4364_s12, %s2921_s20  }
 0x79e PF: > { %s4442_s24 = sld [smem:[#allocation14_spill]]  ;;  %p3490_p4 = scmp.ge.s32.totalorder %s3935_s16, 2 }
 0x79f   : > { %s2954_s28 = sand.u32 1, %s3923_s13  }
 0x7a0   : > { %s2955_s30 = scalar_lea.sflag [#allocation4], %s2954_s28 }
 0x7a4   : > { %p4443_p7 = scmp.ne.s32.totalorder %s4442_s24, 0 }
 0x7a6   : > { %p3483_p8 = pnand %p3490_p4, %p4443_p7 }
 0x7a8   : > { %3918 = dma.done.wait (!%p3483_p8), %s2955_s30, 1024  }
 0x7a9   : > { %3920 = vsyncadd (!%p3483_p8), %s2955_s30, 4294966272  ;;  %s4444_s16 = sld [smem:[#allocation12_spill]]  ;;  %s4445_s21 = sld [smem:[#allocation11_spill]] }
 0x7aa   : > { %s4446_s15 = sld [smem:[#allocation13_spill]]  ;;  %s4447_s13 = smov %s3927_s14 }
 0x7af   : > { %p23_p11 = scmp.ge.s32.totalorder %s4444_s16, 6   ;;  %s4448_s14 = smov %s4445_s21 }
 0x7b1   :  { %25 = sbr.rel (!%p23_p11) target bundleno = 5 (0x5), region = 117 }
 0x7b8   :  { %2967 = vsyncpa [#allocation3], 1 }
 0x7b9   :  { %2969 = vsyncpa [#allocation3 + $0x1], 1 }
 0x7ba   :  { %2970 = vsyncpa [#allocation6], 1 }
 0x7bb   :  { %2971 = vsyncpa [#allocation4], 1 }
 0x7bc   :  { %2973 = vsyncpa [#allocation4 + $0x1], 1 }

</bundles_post_ra>
